<compile_context>
chip_gen: v7x
topology: tpu7x:2x2x1
jax: 0.10.0
libtpu: 0.0.40
codegen_flags: <defaults>
</compile_context>

<pallas_src>
import functools

import jax
import jax.numpy as jnp
from jax import lax
from jax.experimental import pallas as pl
from jax.experimental.pallas import tpu as pltpu

LANE = 128
SUBLANE = 8


def _round_up(x, m):
    return (x + m - 1) // m * m


# ----------------------------------------------------------------------------------
# Kernel: one grid step == one chunk of Tc RNN timesteps (sequential recurrence).
# ----------------------------------------------------------------------------------
def rnn_chunk_kernel(pre_ref, h0_ref, w_h_ref, w_o2o_ref, b_o2o_ref,
                     out_ref, hid_ref, *,
                     tc, hp, t_total, needs_guard, compute_dtype):
    s = pl.program_id(0)

    @pl.when(s == 0)
    def _():
        hid_ref[...] = h0_ref[...]

    # Weights are VMEM-resident (constant index maps); load once per chunk.
    w_h = w_h_ref[...]          # (Hp, Hp+Dp)   fused [W_h_i2h | W_h_i2o]
    w_o2o = w_o2o_ref[...]      # (Hp+Dp, Vp)   fused [W_o2o_h ; W_o2o_o]
    b_o2o = b_o2o_ref[...]      # (1, Vp)       -1e30 baked into padded vocab cols

    def step(t, h):
        # Recurrent part only: one (Bp,Hp)x(Hp,Hp+Dp) MXU pass; the embedding/category
        # contribution was hoisted into `pre` outside the kernel.
        ho = pre_ref[t] + jnp.dot(h.astype(compute_dtype), w_h,
                                  preferred_element_type=jnp.float32)   # (Bp, Hp+Dp)

        # o2o on the already-concatenated [hidden | output] slab: one MXU pass.
        logits = jnp.dot(ho.astype(compute_dtype), w_o2o,
                         preferred_element_type=jnp.float32) + b_o2o    # (Bp, Vp)

        # dropout: identity (eval mode)

        # LogSoftmax(dim=1); padded vocab columns carry a -1e30 bias -> excluded.
        m = jnp.max(logits, axis=1, keepdims=True)
        shifted = logits - m
        lse = jnp.log(jnp.sum(jnp.exp(shifted), axis=1, keepdims=True))
        out_ref[t] = shifted - lse

        h_new = ho[:, :hp]                      # clean slice at the 128-lane boundary
        if needs_guard:                         # only emitted when T % Tc != 0
            h_new = jnp.where(s * tc + t < t_total, h_new, h)
        return h_new

    hid_ref[...] = lax.fori_loop(0, tc, step, hid_ref[...], unroll=True)


# ----------------------------------------------------------------------------------
# One-time parameter preparation: transpose, split, fuse, zero-pad to TPU shapes.
# ----------------------------------------------------------------------------------
def prepare_params(params, *, num_categories, hidden_size,
                   compute_dtype=jnp.float32):
    emb = params["embedding"].astype(jnp.float32)            # (vocab+3, D)
    D = emb.shape[1]
    H = hidden_size
    C = num_categories
    V = params["o2o_w"].shape[0]                              # len(glove) + 3

    Dp = _round_up(D, LANE)
    Hp = _round_up(H, LANE)
    Vp = _round_up(V, LANE)

    def pad2(a, rows, cols):
        return jnp.pad(a, ((0, rows - a.shape[0]), (0, cols - a.shape[1])))

    # Pre-transpose to (in, out); split the concatenated input axis into
    # [category | embedded | hidden] row blocks, then fuse i2h/i2o along the output
    # axis (columns [:Hp] -> i2h, [Hp:] -> i2o) so each step needs one matmul per input.
    w_i2h_t = params["i2h_w"].T.astype(jnp.float32)           # (C+D+H, H)
    w_i2o_t = params["i2o_w"].T.astype(jnp.float32)           # (C+D+H, D)
    w_o2o_t = params["o2o_w"].T.astype(jnp.float32)           # (H+D,  V)

    w_c_cat = jnp.concatenate([pad2(w_i2h_t[:C], C, Hp),
                               pad2(w_i2o_t[:C], C, Dp)], axis=1)          # (C, Hp+Dp)
    w_e_cat = jnp.concatenate([pad2(w_i2h_t[C:C + D], Dp, Hp),
                               pad2(w_i2o_t[C:C + D], Dp, Dp)], axis=1)    # (Dp, Hp+Dp)
    w_h_cat = jnp.concatenate([pad2(w_i2h_t[C + D:], Hp, Hp),
                               pad2(w_i2o_t[C + D:], Hp, Dp)], axis=1)     # (Hp, Hp+Dp)
    b_io_cat = jnp.concatenate(
        [jnp.pad(params["i2h_b"].astype(jnp.float32), (0, Hp - H)),
         jnp.pad(params["i2o_b"].astype(jnp.float32), (0, Dp - D))])       # (Hp+Dp,)

    # Fused o2o weights: rows [hidden | output] stacked to match the ho slab layout.
    w_o2o_cat = jnp.concatenate([pad2(w_o2o_t[:H], Hp, Vp),
                                 pad2(w_o2o_t[H:], Dp, Vp)], axis=0)       # (Hp+Dp, Vp)
    # Bake the vocab mask into the bias: padded columns get -1e30 (weights there are 0).
    b_o2o = jnp.pad(params["o2o_b"].astype(jnp.float32), (0, Vp - V),
                    constant_values=-1e30)[None, :]                        # (1, Vp)

    return {
        "dims": (C, D, H, V, Dp, Hp, Vp),
        "emb": jnp.pad(emb, ((0, 0), (0, Dp - D))),                        # (vocab+3, Dp)
        "w_c_cat": w_c_cat,
        "w_e_cat": w_e_cat.astype(compute_dtype),
        "w_h_cat": w_h_cat.astype(compute_dtype),
        "w_o2o_cat": w_o2o_cat.astype(compute_dtype),
        "b_io_cat": b_io_cat,
        "b_o2o": b_o2o,
    }


# ----------------------------------------------------------------------------------
# Fused-sequence forward: equivalent to calling the PyTorch forward T times with the
# hidden state carried (category fixed for the sequence, as in the generation loop).
# ----------------------------------------------------------------------------------
def rnn_sequence_forward(prepped, category, words, hidden0, *, time_chunk=16):
    """category: (B, C) f32; words: (T, B) int32; hidden0: (B, H) f32.
    Returns (log_probs (T, B, V), final_hidden (B, H))."""
    C, D, H, V, Dp, Hp, Vp = prepped["dims"]
    HDp = Hp + Dp
    T, B = words.shape
    Bp = _round_up(max(B, SUBLANE), SUBLANE)
    compute_dtype = prepped["w_h_cat"].dtype

    Tc = max(1, min(time_chunk, T))
    Tp = _round_up(T, Tc)
    n_chunks = Tp // Tc
    needs_guard = (Tp != T)

    category = category.astype(jnp.float32)
    hidden0 = hidden0.astype(jnp.float32)

    # --- Hoisted, non-recurrent phase (one big GEMM over the whole sequence) ---------
    # Single embedding gather for the whole sequence.
    emb_seq = jnp.take(prepped["emb"], words.reshape(-1), axis=0)          # (T*B, Dp)
    # Category is constant over the sequence: fold its contribution + biases once.
    cat_b = category @ prepped["w_c_cat"] + prepped["b_io_cat"][None, :]   # (B, Hp+Dp)
    pre = jnp.dot(emb_seq.astype(compute_dtype), prepped["w_e_cat"],
                  preferred_element_type=jnp.float32)                      # (T*B, Hp+Dp)
    pre = pre.reshape(T, B, HDp) + cat_b[None]
    pre = jnp.pad(pre, ((0, Tp - T), (0, Bp - B), (0, 0)))                 # (Tp, Bp, HDp)

    h0 = jnp.pad(hidden0, ((0, Bp - B), (0, Hp - H)))                      # (Bp, Hp)

    # --- Sequential recurrence kernel (Tc timesteps per grid iteration) --------------
    kernel = functools.partial(
        rnn_chunk_kernel, tc=Tc, hp=Hp, t_total=T,
        needs_guard=needs_guard, compute_dtype=compute_dtype)

    def const2(shape):
        return pl.BlockSpec(shape, lambda s: (0, 0))

    grid_spec = pltpu.PrefetchScalarGridSpec(
        num_scalar_prefetch=0,
        grid=(n_chunks,),
        in_specs=[
            pl.BlockSpec((Tc, Bp, HDp), lambda s: (s, 0, 0)),   # pre (per-chunk slab)
            const2((Bp, Hp)),                                    # h0
            const2((Hp, HDp)),                                   # fused W_h
            const2((HDp, Vp)),                                   # fused W_o2o
            const2((1, Vp)),                                     # b_o2o (bcast in-kernel)
        ],
        out_specs=(
            pl.BlockSpec((Tc, Bp, Vp), lambda s: (s, 0, 0)),     # per-chunk log-probs
            const2((Bp, Hp)),                                    # hidden carry / final
        ),
        scratch_shapes=[],
    )

    out_pad, hid_pad = pl.pallas_call(
        kernel,
        out_shape=(
            jax.ShapeDtypeStruct((Tp, Bp, Vp), jnp.float32),
            jax.ShapeDtypeStruct((Bp, Hp), jnp.float32),
        ),
        grid_spec=grid_spec,
        compiler_params=pltpu.CompilerParams(
            dimension_semantics=("arbitrary",)),                 # sequential (hidden carry)
    )(pre, h0, prepped["w_h_cat"], prepped["w_o2o_cat"], prepped["b_o2o"])

    return out_pad[:T, :B, :V], hid_pad[:B, :H]


# ----------------------------------------------------------------------------------
# Pure-JAX reference (exact replication of the PyTorch forward, dropout = identity).
# ----------------------------------------------------------------------------------
def rnn_reference(params, category, words, hidden0):
    emb_table = params["embedding"]
    h = hidden0
    outs = []
    for t in range(words.shape[0]):
        embedded = jnp.take(emb_table, words[t], axis=0)
        ic = jnp.concatenate([category, embedded, h], axis=1)
        h = ic @ params["i2h_w"].T + params["i2h_b"]
        o = ic @ params["i2o_w"].T + params["i2o_b"]
        oc = jnp.concatenate([h, o], axis=1)
        logits = oc @ params["o2o_w"].T + params["o2o_b"]
        outs.append(jax.nn.log_softmax(logits, axis=1))
    return jnp.stack(outs, axis=0), h


# ----------------------------------------------------------------------------------
# Deterministic synthetic parameters matching the module's shapes.
# ----------------------------------------------------------------------------------
def init_params(key, *, vocab, glove_dim, hidden_size, num_categories):
    ks = jax.random.split(key, 8)
    in_comb = num_categories + glove_dim + hidden_size
    out_vocab = vocab + 3   # len(glove) + 3

    # embedding = cat(glove_vectors (vocab, 50), rand(3, 50) * 2 - 1)
    glove_vectors = jax.random.normal(ks[0], (vocab, glove_dim), jnp.float32)
    extra = jax.random.uniform(ks[1], (3, glove_dim), jnp.float32) * 2.0 - 1.0
    embedding = jnp.concatenate([glove_vectors, extra], axis=0)

    def linear(kw, kb, out_f, in_f):
        bound = 1.0 / jnp.sqrt(in_f)
        w = jax.random.uniform(kw, (out_f, in_f), jnp.float32, -bound, bound)
        b = jax.random.uniform(kb, (out_f,), jnp.float32, -bound, bound)
        return w, b

    i2h_w, i2h_b = linear(ks[2], ks[3], hidden_size, in_comb)
    i2o_w, i2o_b = linear(ks[4], ks[5], glove_dim, in_comb)
    o2o_w, o2o_b = linear(ks[6], ks[7], out_vocab, hidden_size + glove_dim)

    return {
        "embedding": embedding,
        "i2h_w": i2h_w, "i2h_b": i2h_b,
        "i2o_w": i2o_w, "i2o_b": i2o_b,
        "o2o_w": o2o_w, "o2o_b": o2o_b,
    }


if __name__ == "__main__":
    B = 2
    NUM_CATEGORIES = 4
    GLOVE_DIM = 50
    HIDDEN = 32
    VOCAB = 64            # stands in for len(glove); output size = VOCAB + 3
    T = 8                 # sequence length

    key = jax.random.PRNGKey(0)
    k_p, k_c, k_w = jax.random.split(key, 3)

    params = init_params(k_p, vocab=VOCAB, glove_dim=GLOVE_DIM,
                         hidden_size=HIDDEN, num_categories=NUM_CATEGORIES)
    # compute_dtype=jnp.bfloat16 recommended on v6e/v7x; f32 kept for exact validation.
    prepped = prepare_params(params, num_categories=NUM_CATEGORIES,
                             hidden_size=HIDDEN, compute_dtype=jnp.float32)

    category = jax.nn.one_hot(
        jax.random.randint(k_c, (B,), 0, NUM_CATEGORIES), NUM_CATEGORIES,
        dtype=jnp.float32)
    words = jax.random.randint(k_w, (T, B), 0, VOCAB + 3).astype(jnp.int32)
    hidden0 = jnp.zeros((B, HIDDEN), jnp.float32)

    log_probs, new_hidden = rnn_sequence_forward(prepped, category, words, hidden0,
                                                 time_chunk=16)
    jax.block_until_ready((log_probs, new_hidden))

    # correctness vs. pure-JAX per-step reference
    ref_lp, ref_h = rnn_reference(params, category, words, hidden0)

    assert log_probs.shape == (T, B, VOCAB + 3)
    assert new_hidden.shape == (B, HIDDEN)
    # log-softmax sanity: rows sum to ~1 in prob space
    assert bool(jnp.allclose(jnp.sum(jnp.exp(log_probs), axis=-1), 1.0, atol=1e-3))
    # tolerance covers default TPU matmul precision differences between kernel and ref
    assert bool(jnp.allclose(log_probs, ref_lp, atol=1e-2, rtol=1e-2))
    assert bool(jnp.allclose(new_hidden, ref_h, atol=1e-2, rtol=1e-2))

    print("KERNEL_OK")
</pallas_src>

<mosaic_0001>
module attributes {stable_mosaic.version = 11 : i64} {
  func.func @rnn_chunk_kernel(%arg0: i32, %arg1: memref<8x8x256xf32, #tpu.memory_space<vmem>>, %arg2: memref<8x128xf32, #tpu.memory_space<vmem>>, %arg3: memref<128x256xf32, #tpu.memory_space<vmem>>, %arg4: memref<256x128xf32, #tpu.memory_space<vmem>>, %arg5: memref<1x128xf32, #tpu.memory_space<vmem>>, %arg6: memref<8x8x128xf32, #tpu.memory_space<vmem>>, %arg7: memref<8x128xf32, #tpu.memory_space<vmem>>) attributes {dimension_semantics = [#tpu.dimension_semantics<arbitrary>], iteration_bounds = array<i64: 1>, scalar_prefetch = 0 : i64, scratch_operands = 0 : i64, tpu.core_type = #tpu.core_type<tc>, window_params = [{transform_indices = @transform_0, window_bounds = array<i64: 8, 8, 256>}, {pipeline_mode = #tpu.pipeline_mode<synchronous>, transform_indices = @transform_1, window_bounds = array<i64: 8, 128>}, {pipeline_mode = #tpu.pipeline_mode<synchronous>, transform_indices = @transform_2, window_bounds = array<i64: 128, 256>}, {pipeline_mode = #tpu.pipeline_mode<synchronous>, transform_indices = @transform_3, window_bounds = array<i64: 256, 128>}, {pipeline_mode = #tpu.pipeline_mode<synchronous>, transform_indices = @transform_4, window_bounds = array<i64: 1, 128>}, {transform_indices = @transform_5, window_bounds = array<i64: 8, 8, 128>}, {pipeline_mode = #tpu.pipeline_mode<synchronous>, transform_indices = @transform_6, window_bounds = array<i64: 8, 128>}]} {
    %c0_i32 = arith.constant 0 : i32
    %0 = arith.cmpi eq, %arg0, %c0_i32 : i32
    %1 = arith.extui %0 : i1 to i32
    %c0_i32_0 = arith.constant 0 : i32
    %2 = arith.cmpi ne, %1, %c0_i32_0 : i32
    scf.if %2 {
      %c0_74 = arith.constant 0 : index
      %c0_75 = arith.constant 0 : index
      %192 = vector.load %arg2[%c0_74, %c0_75] : memref<8x128xf32, #tpu.memory_space<vmem>>, vector<8x128xf32>
      %c0_76 = arith.constant 0 : index
      %c0_77 = arith.constant 0 : index
      %193 = vector.load %arg7[%c0_76, %c0_77] : memref<8x128xf32, #tpu.memory_space<vmem>>, vector<8x128xf32>
      tpu.vector_store %arg7[%c0_76, %c0_77], %192 {strides = array<i32>} : memref<8x128xf32, #tpu.memory_space<vmem>>, vector<8x128xf32>,
    } else {
    }
    %c0 = arith.constant 0 : index
    %c0_1 = arith.constant 0 : index
    %3 = vector.load %arg3[%c0, %c0_1] : memref<128x256xf32, #tpu.memory_space<vmem>>, vector<128x256xf32>
    %c0_2 = arith.constant 0 : index
    %c0_3 = arith.constant 0 : index
    %4 = vector.load %arg4[%c0_2, %c0_3] : memref<256x128xf32, #tpu.memory_space<vmem>>, vector<256x128xf32>
    %c0_4 = arith.constant 0 : index
    %c0_5 = arith.constant 0 : index
    %5 = vector.load %arg5[%c0_4, %c0_5] : memref<1x128xf32, #tpu.memory_space<vmem>>, vector<1x128xf32>
    %c0_6 = arith.constant 0 : index
    %c0_7 = arith.constant 0 : index
    %6 = vector.load %arg7[%c0_6, %c0_7] : memref<8x128xf32, #tpu.memory_space<vmem>>, vector<8x128xf32>
    %c0_i32_8 = arith.constant 0 : i32
    %7 = arith.index_cast %c0_i32_8 : i32 to index
    %c0_9 = arith.constant 0 : index
    %c0_10 = arith.constant 0 : index
    %8 = vector.load %arg1[%7, %c0_9, %c0_10] : memref<8x8x256xf32, #tpu.memory_space<vmem>>, vector<1x8x256xf32>
    %9 = vector.shape_cast %8 : vector<1x8x256xf32> to vector<8x256xf32>
    %cst = arith.constant dense<0.000000e+00> : vector<8x256xf32>
    %10 = tpu.matmul %6, %3, %cst {dimension_numbers = #tpu.dot_dimension_numbers<[1], [0], [0], [1], [0, 0, 1, 1], [], []>} : vector<8x128xf32>, vector<128x256xf32>, vector<8x256xf32> -> vector<8x256xf32>
    %11 = arith.addf %9, %10 : vector<8x256xf32>
    %cst_11 = arith.constant dense<0.000000e+00> : vector<8x128xf32>
    %12 = tpu.matmul %11, %4, %cst_11 {dimension_numbers = #tpu.dot_dimension_numbers<[1], [0], [0], [1], [0, 0, 1, 1], [], []>} : vector<8x256xf32>, vector<256x128xf32>, vector<8x128xf32> -> vector<8x128xf32>
    %13 = vector.broadcast %5 : vector<1x128xf32> to vector<8x128xf32>
    %14 = arith.addf %12, %13 : vector<8x128xf32>
    %cst_12 = arith.constant dense<0xFF800000> : vector<8xf32>
    %15 = vector.multi_reduction <maximumf>, %14, %cst_12 [1] : vector<8x128xf32> to vector<8xf32>
    %16 = vector.shape_cast %15 : vector<8xf32> to vector<8x1xf32>
    %17 = vector.broadcast %16 : vector<8x1xf32> to vector<8x128xf32>
    %18 = arith.subf %14, %17 : vector<8x128xf32>
    %19 = math.exp %18 : vector<8x128xf32>
    %cst_13 = arith.constant dense<0.000000e+00> : vector<8xf32>
    %20 = vector.multi_reduction <add>, %19, %cst_13 [1] : vector<8x128xf32> to vector<8xf32>
    %21 = vector.shape_cast %20 : vector<8xf32> to vector<8x1xf32>
    %22 = math.log %21 : vector<8x1xf32>
    %23 = vector.broadcast %22 : vector<8x1xf32> to vector<8x128xf32>
    %24 = arith.subf %18, %23 : vector<8x128xf32>
    %25 = arith.index_cast %c0_i32_8 : i32 to index
    %c0_14 = arith.constant 0 : index
    %c0_15 = arith.constant 0 : index
    %26 = vector.load %arg6[%25, %c0_14, %c0_15] : memref<8x8x128xf32, #tpu.memory_space<vmem>>, vector<1x8x128xf32>
    %27 = vector.shape_cast %26 : vector<1x8x128xf32> to vector<8x128xf32>
    %28 = vector.shape_cast %24 : vector<8x128xf32> to vector<1x8x128xf32>
    tpu.vector_store %arg6[%25, %c0_14, %c0_15], %28 {strides = array<i32>} : memref<8x8x128xf32, #tpu.memory_space<vmem>>, vector<1x8x128xf32>,
    %29 = vector.extract_strided_slice %11 {offsets = [0, 0], sizes = [8, 128], strides = [1, 1]} : vector<8x256xf32> to vector<8x128xf32>
    %c1_i32 = arith.constant 1 : i32
    %30 = arith.index_cast %c1_i32 : i32 to index
    %c0_16 = arith.constant 0 : index
    %c0_17 = arith.constant 0 : index
    %31 = vector.load %arg1[%30, %c0_16, %c0_17] : memref<8x8x256xf32, #tpu.memory_space<vmem>>, vector<1x8x256xf32>
    %32 = vector.shape_cast %31 : vector<1x8x256xf32> to vector<8x256xf32>
    %cst_18 = arith.constant dense<0.000000e+00> : vector<8x256xf32>
    %33 = tpu.matmul %29, %3, %cst_18 {dimension_numbers = #tpu.dot_dimension_numbers<[1], [0], [0], [1], [0, 0, 1, 1], [], []>} : vector<8x128xf32>, vector<128x256xf32>, vector<8x256xf32> -> vector<8x256xf32>
    %34 = arith.addf %32, %33 : vector<8x256xf32>
    %cst_19 = arith.constant dense<0.000000e+00> : vector<8x128xf32>
    %35 = tpu.matmul %34, %4, %cst_19 {dimension_numbers = #tpu.dot_dimension_numbers<[1], [0], [0], [1], [0, 0, 1, 1], [], []>} : vector<8x256xf32>, vector<256x128xf32>, vector<8x128xf32> -> vector<8x128xf32>
    %36 = vector.broadcast %5 : vector<1x128xf32> to vector<8x128xf32>
    %37 = arith.addf %35, %36 : vector<8x128xf32>
    %cst_20 = arith.constant dense<0xFF800000> : vector<8xf32>
    %38 = vector.multi_reduction <maximumf>, %37, %cst_20 [1] : vector<8x128xf32> to vector<8xf32>
    %39 = vector.shape_cast %38 : vector<8xf32> to vector<8x1xf32>
    %40 = vector.broadcast %39 : vector<8x1xf32> to vector<8x128xf32>
    %41 = arith.subf %37, %40 : vector<8x128xf32>
    %42 = math.exp %41 : vector<8x128xf32>
    %cst_21 = arith.constant dense<0.000000e+00> : vector<8xf32>
    %43 = vector.multi_reduction <add>, %42, %cst_21 [1] : vector<8x128xf32> to vector<8xf32>
    %44 = vector.shape_cast %43 : vector<8xf32> to vector<8x1xf32>
    %45 = math.log %44 : vector<8x1xf32>
    %46 = vector.broadcast %45 : vector<8x1xf32> to vector<8x128xf32>
    %47 = arith.subf %41, %46 : vector<8x128xf32>
    %48 = arith.index_cast %c1_i32 : i32 to index
    %c0_22 = arith.constant 0 : index
    %c0_23 = arith.constant 0 : index
    %49 = vector.load %arg6[%48, %c0_22, %c0_23] : memref<8x8x128xf32, #tpu.memory_space<vmem>>, vector<1x8x128xf32>
    %50 = vector.shape_cast %49 : vector<1x8x128xf32> to vector<8x128xf32>
    %51 = vector.shape_cast %47 : vector<8x128xf32> to vector<1x8x128xf32>
    tpu.vector_store %arg6[%48, %c0_22, %c0_23], %51 {strides = array<i32>} : memref<8x8x128xf32, #tpu.memory_space<vmem>>, vector<1x8x128xf32>,
    %52 = vector.extract_strided_slice %34 {offsets = [0, 0], sizes = [8, 128], strides = [1, 1]} : vector<8x256xf32> to vector<8x128xf32>
    %c2_i32 = arith.constant 2 : i32
    %53 = arith.index_cast %c2_i32 : i32 to index
    %c0_24 = arith.constant 0 : index
    %c0_25 = arith.constant 0 : index
    %54 = vector.load %arg1[%53, %c0_24, %c0_25] : memref<8x8x256xf32, #tpu.memory_space<vmem>>, vector<1x8x256xf32>
    %55 = vector.shape_cast %54 : vector<1x8x256xf32> to vector<8x256xf32>
    %cst_26 = arith.constant dense<0.000000e+00> : vector<8x256xf32>
    %56 = tpu.matmul %52, %3, %cst_26 {dimension_numbers = #tpu.dot_dimension_numbers<[1], [0], [0], [1], [0, 0, 1, 1], [], []>} : vector<8x128xf32>, vector<128x256xf32>, vector<8x256xf32> -> vector<8x256xf32>
    %57 = arith.addf %55, %56 : vector<8x256xf32>
    %cst_27 = arith.constant dense<0.000000e+00> : vector<8x128xf32>
    %58 = tpu.matmul %57, %4, %cst_27 {dimension_numbers = #tpu.dot_dimension_numbers<[1], [0], [0], [1], [0, 0, 1, 1], [], []>} : vector<8x256xf32>, vector<256x128xf32>, vector<8x128xf32> -> vector<8x128xf32>
    %59 = vector.broadcast %5 : vector<1x128xf32> to vector<8x128xf32>
    %60 = arith.addf %58, %59 : vector<8x128xf32>
    %cst_28 = arith.constant dense<0xFF800000> : vector<8xf32>
    %61 = vector.multi_reduction <maximumf>, %60, %cst_28 [1] : vector<8x128xf32> to vector<8xf32>
    %62 = vector.shape_cast %61 : vector<8xf32> to vector<8x1xf32>
    %63 = vector.broadcast %62 : vector<8x1xf32> to vector<8x128xf32>
    %64 = arith.subf %60, %63 : vector<8x128xf32>
    %65 = math.exp %64 : vector<8x128xf32>
    %cst_29 = arith.constant dense<0.000000e+00> : vector<8xf32>
    %66 = vector.multi_reduction <add>, %65, %cst_29 [1] : vector<8x128xf32> to vector<8xf32>
    %67 = vector.shape_cast %66 : vector<8xf32> to vector<8x1xf32>
    %68 = math.log %67 : vector<8x1xf32>
    %69 = vector.broadcast %68 : vector<8x1xf32> to vector<8x128xf32>
    %70 = arith.subf %64, %69 : vector<8x128xf32>
    %71 = arith.index_cast %c2_i32 : i32 to index
    %c0_30 = arith.constant 0 : index
    %c0_31 = arith.constant 0 : index
    %72 = vector.load %arg6[%71, %c0_30, %c0_31] : memref<8x8x128xf32, #tpu.memory_space<vmem>>, vector<1x8x128xf32>
    %73 = vector.shape_cast %72 : vector<1x8x128xf32> to vector<8x128xf32>
    %74 = vector.shape_cast %70 : vector<8x128xf32> to vector<1x8x128xf32>
    tpu.vector_store %arg6[%71, %c0_30, %c0_31], %74 {strides = array<i32>} : memref<8x8x128xf32, #tpu.memory_space<vmem>>, vector<1x8x128xf32>,
    %75 = vector.extract_strided_slice %57 {offsets = [0, 0], sizes = [8, 128], strides = [1, 1]} : vector<8x256xf32> to vector<8x128xf32>
    %c3_i32 = arith.constant 3 : i32
    %76 = arith.index_cast %c3_i32 : i32 to index
    %c0_32 = arith.constant 0 : index
    %c0_33 = arith.constant 0 : index
    %77 = vector.load %arg1[%76, %c0_32, %c0_33] : memref<8x8x256xf32, #tpu.memory_space<vmem>>, vector<1x8x256xf32>
    %78 = vector.shape_cast %77 : vector<1x8x256xf32> to vector<8x256xf32>
    %cst_34 = arith.constant dense<0.000000e+00> : vector<8x256xf32>
    %79 = tpu.matmul %75, %3, %cst_34 {dimension_numbers = #tpu.dot_dimension_numbers<[1], [0], [0], [1], [0, 0, 1, 1], [], []>} : vector<8x128xf32>, vector<128x256xf32>, vector<8x256xf32> -> vector<8x256xf32>
    %80 = arith.addf %78, %79 : vector<8x256xf32>
    %cst_35 = arith.constant dense<0.000000e+00> : vector<8x128xf32>
    %81 = tpu.matmul %80, %4, %cst_35 {dimension_numbers = #tpu.dot_dimension_numbers<[1], [0], [0], [1], [0, 0, 1, 1], [], []>} : vector<8x256xf32>, vector<256x128xf32>, vector<8x128xf32> -> vector<8x128xf32>
    %82 = vector.broadcast %5 : vector<1x128xf32> to vector<8x128xf32>
    %83 = arith.addf %81, %82 : vector<8x128xf32>
    %cst_36 = arith.constant dense<0xFF800000> : vector<8xf32>
    %84 = vector.multi_reduction <maximumf>, %83, %cst_36 [1] : vector<8x128xf32> to vector<8xf32>
    %85 = vector.shape_cast %84 : vector<8xf32> to vector<8x1xf32>
    %86 = vector.broadcast %85 : vector<8x1xf32> to vector<8x128xf32>
    %87 = arith.subf %83, %86 : vector<8x128xf32>
    %88 = math.exp %87 : vector<8x128xf32>
    %cst_37 = arith.constant dense<0.000000e+00> : vector<8xf32>
    %89 = vector.multi_reduction <add>, %88, %cst_37 [1] : vector<8x128xf32> to vector<8xf32>
    %90 = vector.shape_cast %89 : vector<8xf32> to vector<8x1xf32>
    %91 = math.log %90 : vector<8x1xf32>
    %92 = vector.broadcast %91 : vector<8x1xf32> to vector<8x128xf32>
    %93 = arith.subf %87, %92 : vector<8x128xf32>
    %94 = arith.index_cast %c3_i32 : i32 to index
    %c0_38 = arith.constant 0 : index
    %c0_39 = arith.constant 0 : index
    %95 = vector.load %arg6[%94, %c0_38, %c0_39] : memref<8x8x128xf32, #tpu.memory_space<vmem>>, vector<1x8x128xf32>
    %96 = vector.shape_cast %95 : vector<1x8x128xf32> to vector<8x128xf32>
    %97 = vector.shape_cast %93 : vector<8x128xf32> to vector<1x8x128xf32>
    tpu.vector_store %arg6[%94, %c0_38, %c0_39], %97 {strides = array<i32>} : memref<8x8x128xf32, #tpu.memory_space<vmem>>, vector<1x8x128xf32>,
    %98 = vector.extract_strided_slice %80 {offsets = [0, 0], sizes = [8, 128], strides = [1, 1]} : vector<8x256xf32> to vector<8x128xf32>
    %c4_i32 = arith.constant 4 : i32
    %99 = arith.index_cast %c4_i32 : i32 to index
    %c0_40 = arith.constant 0 : index
    %c0_41 = arith.constant 0 : index
    %100 = vector.load %arg1[%99, %c0_40, %c0_41] : memref<8x8x256xf32, #tpu.memory_space<vmem>>, vector<1x8x256xf32>
    %101 = vector.shape_cast %100 : vector<1x8x256xf32> to vector<8x256xf32>
    %cst_42 = arith.constant dense<0.000000e+00> : vector<8x256xf32>
    %102 = tpu.matmul %98, %3, %cst_42 {dimension_numbers = #tpu.dot_dimension_numbers<[1], [0], [0], [1], [0, 0, 1, 1], [], []>} : vector<8x128xf32>, vector<128x256xf32>, vector<8x256xf32> -> vector<8x256xf32>
    %103 = arith.addf %101, %102 : vector<8x256xf32>
    %cst_43 = arith.constant dense<0.000000e+00> : vector<8x128xf32>
    %104 = tpu.matmul %103, %4, %cst_43 {dimension_numbers = #tpu.dot_dimension_numbers<[1], [0], [0], [1], [0, 0, 1, 1], [], []>} : vector<8x256xf32>, vector<256x128xf32>, vector<8x128xf32> -> vector<8x128xf32>
    %105 = vector.broadcast %5 : vector<1x128xf32> to vector<8x128xf32>
    %106 = arith.addf %104, %105 : vector<8x128xf32>
    %cst_44 = arith.constant dense<0xFF800000> : vector<8xf32>
    %107 = vector.multi_reduction <maximumf>, %106, %cst_44 [1] : vector<8x128xf32> to vector<8xf32>
    %108 = vector.shape_cast %107 : vector<8xf32> to vector<8x1xf32>
    %109 = vector.broadcast %108 : vector<8x1xf32> to vector<8x128xf32>
    %110 = arith.subf %106, %109 : vector<8x128xf32>
    %111 = math.exp %110 : vector<8x128xf32>
    %cst_45 = arith.constant dense<0.000000e+00> : vector<8xf32>
    %112 = vector.multi_reduction <add>, %111, %cst_45 [1] : vector<8x128xf32> to vector<8xf32>
    %113 = vector.shape_cast %112 : vector<8xf32> to vector<8x1xf32>
    %114 = math.log %113 : vector<8x1xf32>
    %115 = vector.broadcast %114 : vector<8x1xf32> to vector<8x128xf32>
    %116 = arith.subf %110, %115 : vector<8x128xf32>
    %117 = arith.index_cast %c4_i32 : i32 to index
    %c0_46 = arith.constant 0 : index
    %c0_47 = arith.constant 0 : index
    %118 = vector.load %arg6[%117, %c0_46, %c0_47] : memref<8x8x128xf32, #tpu.memory_space<vmem>>, vector<1x8x128xf32>
    %119 = vector.shape_cast %118 : vector<1x8x128xf32> to vector<8x128xf32>
    %120 = vector.shape_cast %116 : vector<8x128xf32> to vector<1x8x128xf32>
    tpu.vector_store %arg6[%117, %c0_46, %c0_47], %120 {strides = array<i32>} : memref<8x8x128xf32, #tpu.memory_space<vmem>>, vector<1x8x128xf32>,
    %121 = vector.extract_strided_slice %103 {offsets = [0, 0], sizes = [8, 128], strides = [1, 1]} : vector<8x256xf32> to vector<8x128xf32>
    %c5_i32 = arith.constant 5 : i32
    %122 = arith.index_cast %c5_i32 : i32 to index
    %c0_48 = arith.constant 0 : index
    %c0_49 = arith.constant 0 : index
    %123 = vector.load %arg1[%122, %c0_48, %c0_49] : memref<8x8x256xf32, #tpu.memory_space<vmem>>, vector<1x8x256xf32>
    %124 = vector.shape_cast %123 : vector<1x8x256xf32> to vector<8x256xf32>
    %cst_50 = arith.constant dense<0.000000e+00> : vector<8x256xf32>
    %125 = tpu.matmul %121, %3, %cst_50 {dimension_numbers = #tpu.dot_dimension_numbers<[1], [0], [0], [1], [0, 0, 1, 1], [], []>} : vector<8x128xf32>, vector<128x256xf32>, vector<8x256xf32> -> vector<8x256xf32>
    %126 = arith.addf %124, %125 : vector<8x256xf32>
    %cst_51 = arith.constant dense<0.000000e+00> : vector<8x128xf32>
    %127 = tpu.matmul %126, %4, %cst_51 {dimension_numbers = #tpu.dot_dimension_numbers<[1], [0], [0], [1], [0, 0, 1, 1], [], []>} : vector<8x256xf32>, vector<256x128xf32>, vector<8x128xf32> -> vector<8x128xf32>
    %128 = vector.broadcast %5 : vector<1x128xf32> to vector<8x128xf32>
    %129 = arith.addf %127, %128 : vector<8x128xf32>
    %cst_52 = arith.constant dense<0xFF800000> : vector<8xf32>
    %130 = vector.multi_reduction <maximumf>, %129, %cst_52 [1] : vector<8x128xf32> to vector<8xf32>
    %131 = vector.shape_cast %130 : vector<8xf32> to vector<8x1xf32>
    %132 = vector.broadcast %131 : vector<8x1xf32> to vector<8x128xf32>
    %133 = arith.subf %129, %132 : vector<8x128xf32>
    %134 = math.exp %133 : vector<8x128xf32>
    %cst_53 = arith.constant dense<0.000000e+00> : vector<8xf32>
    %135 = vector.multi_reduction <add>, %134, %cst_53 [1] : vector<8x128xf32> to vector<8xf32>
    %136 = vector.shape_cast %135 : vector<8xf32> to vector<8x1xf32>
    %137 = math.log %136 : vector<8x1xf32>
    %138 = vector.broadcast %137 : vector<8x1xf32> to vector<8x128xf32>
    %139 = arith.subf %133, %138 : vector<8x128xf32>
    %140 = arith.index_cast %c5_i32 : i32 to index
    %c0_54 = arith.constant 0 : index
    %c0_55 = arith.constant 0 : index
    %141 = vector.load %arg6[%140, %c0_54, %c0_55] : memref<8x8x128xf32, #tpu.memory_space<vmem>>, vector<1x8x128xf32>
    %142 = vector.shape_cast %141 : vector<1x8x128xf32> to vector<8x128xf32>
    %143 = vector.shape_cast %139 : vector<8x128xf32> to vector<1x8x128xf32>
    tpu.vector_store %arg6[%140, %c0_54, %c0_55], %143 {strides = array<i32>} : memref<8x8x128xf32, #tpu.memory_space<vmem>>, vector<1x8x128xf32>,
    %144 = vector.extract_strided_slice %126 {offsets = [0, 0], sizes = [8, 128], strides = [1, 1]} : vector<8x256xf32> to vector<8x128xf32>
    %c6_i32 = arith.constant 6 : i32
    %145 = arith.index_cast %c6_i32 : i32 to index
    %c0_56 = arith.constant 0 : index
    %c0_57 = arith.constant 0 : index
    %146 = vector.load %arg1[%145, %c0_56, %c0_57] : memref<8x8x256xf32, #tpu.memory_space<vmem>>, vector<1x8x256xf32>
    %147 = vector.shape_cast %146 : vector<1x8x256xf32> to vector<8x256xf32>
    %cst_58 = arith.constant dense<0.000000e+00> : vector<8x256xf32>
    %148 = tpu.matmul %144, %3, %cst_58 {dimension_numbers = #tpu.dot_dimension_numbers<[1], [0], [0], [1], [0, 0, 1, 1], [], []>} : vector<8x128xf32>, vector<128x256xf32>, vector<8x256xf32> -> vector<8x256xf32>
    %149 = arith.addf %147, %148 : vector<8x256xf32>
    %cst_59 = arith.constant dense<0.000000e+00> : vector<8x128xf32>
    %150 = tpu.matmul %149, %4, %cst_59 {dimension_numbers = #tpu.dot_dimension_numbers<[1], [0], [0], [1], [0, 0, 1, 1], [], []>} : vector<8x256xf32>, vector<256x128xf32>, vector<8x128xf32> -> vector<8x128xf32>
    %151 = vector.broadcast %5 : vector<1x128xf32> to vector<8x128xf32>
    %152 = arith.addf %150, %151 : vector<8x128xf32>
    %cst_60 = arith.constant dense<0xFF800000> : vector<8xf32>
    %153 = vector.multi_reduction <maximumf>, %152, %cst_60 [1] : vector<8x128xf32> to vector<8xf32>
    %154 = vector.shape_cast %153 : vector<8xf32> to vector<8x1xf32>
    %155 = vector.broadcast %154 : vector<8x1xf32> to vector<8x128xf32>
    %156 = arith.subf %152, %155 : vector<8x128xf32>
    %157 = math.exp %156 : vector<8x128xf32>
    %cst_61 = arith.constant dense<0.000000e+00> : vector<8xf32>
    %158 = vector.multi_reduction <add>, %157, %cst_61 [1] : vector<8x128xf32> to vector<8xf32>
    %159 = vector.shape_cast %158 : vector<8xf32> to vector<8x1xf32>
    %160 = math.log %159 : vector<8x1xf32>
    %161 = vector.broadcast %160 : vector<8x1xf32> to vector<8x128xf32>
    %162 = arith.subf %156, %161 : vector<8x128xf32>
    %163 = arith.index_cast %c6_i32 : i32 to index
    %c0_62 = arith.constant 0 : index
    %c0_63 = arith.constant 0 : index
    %164 = vector.load %arg6[%163, %c0_62, %c0_63] : memref<8x8x128xf32, #tpu.memory_space<vmem>>, vector<1x8x128xf32>
    %165 = vector.shape_cast %164 : vector<1x8x128xf32> to vector<8x128xf32>
    %166 = vector.shape_cast %162 : vector<8x128xf32> to vector<1x8x128xf32>
    tpu.vector_store %arg6[%163, %c0_62, %c0_63], %166 {strides = array<i32>} : memref<8x8x128xf32, #tpu.memory_space<vmem>>, vector<1x8x128xf32>,
    %167 = vector.extract_strided_slice %149 {offsets = [0, 0], sizes = [8, 128], strides = [1, 1]} : vector<8x256xf32> to vector<8x128xf32>
    %c7_i32 = arith.constant 7 : i32
    %168 = arith.index_cast %c7_i32 : i32 to index
    %c0_64 = arith.constant 0 : index
    %c0_65 = arith.constant 0 : index
    %169 = vector.load %arg1[%168, %c0_64, %c0_65] : memref<8x8x256xf32, #tpu.memory_space<vmem>>, vector<1x8x256xf32>
    %170 = vector.shape_cast %169 : vector<1x8x256xf32> to vector<8x256xf32>
    %cst_66 = arith.constant dense<0.000000e+00> : vector<8x256xf32>
    %171 = tpu.matmul %167, %3, %cst_66 {dimension_numbers = #tpu.dot_dimension_numbers<[1], [0], [0], [1], [0, 0, 1, 1], [], []>} : vector<8x128xf32>, vector<128x256xf32>, vector<8x256xf32> -> vector<8x256xf32>
    %172 = arith.addf %170, %171 : vector<8x256xf32>
    %cst_67 = arith.constant dense<0.000000e+00> : vector<8x128xf32>
    %173 = tpu.matmul %172, %4, %cst_67 {dimension_numbers = #tpu.dot_dimension_numbers<[1], [0], [0], [1], [0, 0, 1, 1], [], []>} : vector<8x256xf32>, vector<256x128xf32>, vector<8x128xf32> -> vector<8x128xf32>
    %174 = vector.broadcast %5 : vector<1x128xf32> to vector<8x128xf32>
    %175 = arith.addf %173, %174 : vector<8x128xf32>
    %cst_68 = arith.constant dense<0xFF800000> : vector<8xf32>
    %176 = vector.multi_reduction <maximumf>, %175, %cst_68 [1] : vector<8x128xf32> to vector<8xf32>
    %177 = vector.shape_cast %176 : vector<8xf32> to vector<8x1xf32>
    %178 = vector.broadcast %177 : vector<8x1xf32> to vector<8x128xf32>
    %179 = arith.subf %175, %178 : vector<8x128xf32>
    %180 = math.exp %179 : vector<8x128xf32>
    %cst_69 = arith.constant dense<0.000000e+00> : vector<8xf32>
    %181 = vector.multi_reduction <add>, %180, %cst_69 [1] : vector<8x128xf32> to vector<8xf32>
    %182 = vector.shape_cast %181 : vector<8xf32> to vector<8x1xf32>
    %183 = math.log %182 : vector<8x1xf32>
    %184 = vector.broadcast %183 : vector<8x1xf32> to vector<8x128xf32>
    %185 = arith.subf %179, %184 : vector<8x128xf32>
    %186 = arith.index_cast %c7_i32 : i32 to index
    %c0_70 = arith.constant 0 : index
    %c0_71 = arith.constant 0 : index
    %187 = vector.load %arg6[%186, %c0_70, %c0_71] : memref<8x8x128xf32, #tpu.memory_space<vmem>>, vector<1x8x128xf32>
    %188 = vector.shape_cast %187 : vector<1x8x128xf32> to vector<8x128xf32>
    %189 = vector.shape_cast %185 : vector<8x128xf32> to vector<1x8x128xf32>
    tpu.vector_store %arg6[%186, %c0_70, %c0_71], %189 {strides = array<i32>} : memref<8x8x128xf32, #tpu.memory_space<vmem>>, vector<1x8x128xf32>,
    %190 = vector.extract_strided_slice %172 {offsets = [0, 0], sizes = [8, 128], strides = [1, 1]} : vector<8x256xf32> to vector<8x128xf32>
    %c8_i32 = arith.constant 8 : i32
    %c0_72 = arith.constant 0 : index
    %c0_73 = arith.constant 0 : index
    %191 = vector.load %arg7[%c0_72, %c0_73] : memref<8x128xf32, #tpu.memory_space<vmem>>, vector<8x128xf32>
    tpu.vector_store %arg7[%c0_72, %c0_73], %190 {strides = array<i32>} : memref<8x128xf32, #tpu.memory_space<vmem>>, vector<8x128xf32>,
    return
  }
  func.func @transform_0(%arg0: i32) -> (i32, i32, i32) {
    %c0_i32 = arith.constant 0 : i32
    %c0_i32_0 = arith.constant 0 : i32
    %c0_i32_1 = arith.constant 0 : i32
    return %arg0, %c0_i32, %c0_i32_0 : i32, i32, i32
  }
  func.func @transform_1(%arg0: i32) -> (i32, i32) {
    %c0_i32 = arith.constant 0 : i32
    %c0_i32_0 = arith.constant 0 : i32
    %c0_i32_1 = arith.constant 0 : i32
    return %c0_i32, %c0_i32_0 : i32, i32
  }
  func.func @transform_2(%arg0: i32) -> (i32, i32) {
    %c0_i32 = arith.constant 0 : i32
    %c0_i32_0 = arith.constant 0 : i32
    %c0_i32_1 = arith.constant 0 : i32
    return %c0_i32, %c0_i32_0 : i32, i32
  }
  func.func @transform_3(%arg0: i32) -> (i32, i32) {
    %c0_i32 = arith.constant 0 : i32
    %c0_i32_0 = arith.constant 0 : i32
    %c0_i32_1 = arith.constant 0 : i32
    return %c0_i32, %c0_i32_0 : i32, i32
  }
  func.func @transform_4(%arg0: i32) -> (i32, i32) {
    %c0_i32 = arith.constant 0 : i32
    %c0_i32_0 = arith.constant 0 : i32
    %c0_i32_1 = arith.constant 0 : i32
    return %c0_i32, %c0_i32_0 : i32, i32
  }
  func.func @transform_5(%arg0: i32) -> (i32, i32, i32) {
    %c0_i32 = arith.constant 0 : i32
    %c0_i32_0 = arith.constant 0 : i32
    %c0_i32_1 = arith.constant 0 : i32
    return %arg0, %c0_i32, %c0_i32_0 : i32, i32, i32
  }
  func.func @transform_6(%arg0: i32) -> (i32, i32) {
    %c0_i32 = arith.constant 0 : i32
    %c0_i32_0 = arith.constant 0 : i32
    %c0_i32_1 = arith.constant 0 : i32
    return %c0_i32, %c0_i32_0 : i32, i32
  }
}

</mosaic_0001>

<bundles_post_ra>
// kernel: tpu_custom_call.1
= control target key start
LH: loop header
LB: loop body
LE: loop exit
PB: predicated region body
PF: predicated region fallthrough
CT: control target
= control target key end

     0   :  { %12 = vsyncpa [#allocation3], 0  ;;  %s2932_s0 = inlined_call_operand.hbm [shape: f32[8,8,256], index: 0, kind: input, shape index: {}]   ;;  %s2933_s1 = inlined_call_operand.hbm [shape: f32[8,128], index: 1, kind: input, shape index: {}]   ;;  %s2934_s2 = inlined_call_operand.hbm [shape: f32[128,256], index: 2, kind: input, shape index: {}]   ;;  %s2935_s3 = inlined_call_operand.hbm [shape: f32[256,128], index: 3, kind: input, shape index: {}]   ;;  %s2936_s4 = inlined_call_operand.vmem [shape: f32[1,128], index: 4, kind: input, shape index: {}]   ;;  %s2937_s5 = inlined_call_operand.hbm [shape: f32[8,8,128], index: 5, kind: output, shape index: {0}]   ;;  %s2938_s6 = inlined_call_operand.hbm [shape: f32[8,128], index: 6, kind: output, shape index: {1}]  }
   0x1   :  { %13 = vsyncpa [#allocation6], 0 }
   0x2   :  { %14 = vsyncpa [#allocation9], 0 }
   0x3   :  { %15 = vsyncpa [#allocation4], 0 }
   0x4   :  { %16 = vsyncpa [#allocation12], 0  ;;  %s2429_s21 = smov [#allocation5]   ;;  %s2430_s23 = smov [#allocation2]  }
   0x5   :  { %s35_s22 = sshll.u32 %s2429_s21, 4  ;;  %s22_s24 = sshll.u32 %s2430_s23, 4  ;;  %s36_s22 = int_to_ptr.vmem [resolvable:$true] %s35_s22  ;;  %s2475_s24 = int_to_ptr.vmem [resolvable:$true] %s22_s24 }
   0x6   :  { %s2287_s27 = scalar_lea.hbm %s2933_s1, 128 }
   0x7   :  { %p2288_p0 = scmp.ne.s32.totalorder %s2933_s1, %s2287_s27  ;;  %p2291_p1 = scmp.lt.u32.totalorder %s2287_s27, %s2933_s1 }
   0x9   :  { %p2293_p2 = pnand %p2291_p1, %p2288_p0 }
   0xb   :  { %2296 = shalt.err (!%p2293_p2)
}
   0xc   :  { %s2297_s8 = scalar_lea.vmem %s36_s22, 128  ;;  %p2302_p4 = scmp.lt.s32.totalorder %s36_s22, %s36_s22 }
   0xd   :  { %p2298_p3 = scmp.ne.s32.totalorder %s36_s22, %s2297_s8  ;;  %p2303_p5 = scmp.lt.s32.totalorder %s2297_s8, %s2297_s8 }
   0xf   :  { %p2304_p6 = por %p2303_p5, %p2302_p4 }
  0x11   :  { %p2305_p7 = pnand %p2304_p6, %p2298_p3 }
  0x13   :  { %2308 = shalt.err (!%p2305_p7)
}
  0x14   :  { %38 = dma.hbm_to_vmem [thread:$0]  %s2933_s1, 128, %s36_s22, [#allocation6]  }
  0x15   :  { %s2309_s13 = scalar_lea.hbm %s2932_s0, 2048 }
  0x16   :  { %p2310_p8 = scmp.ne.s32.totalorder %s2932_s0, %s2309_s13  ;;  %p2313_p9 = scmp.lt.u32.totalorder %s2309_s13, %s2932_s0 }
  0x18   :  { %p2315_p10 = pnand %p2313_p9, %p2310_p8 }
  0x1a   :  { %2318 = shalt.err (!%p2315_p10)
}
  0x1b   :  { %s2319_s18 = scalar_lea.vmem %s2475_s24, 2048  ;;  %p2324_p12 = scmp.lt.s32.totalorder %s2475_s24, %s2475_s24 }
  0x1c   :  { %p2320_p11 = scmp.ne.s32.totalorder %s2475_s24, %s2319_s18  ;;  %p2325_p13 = scmp.lt.s32.totalorder %s2319_s18, %s2319_s18 }
  0x1e   :  { %p2326_p0 = por %p2325_p13, %p2324_p12 }
  0x20   :  { %p2327_p1 = pnand %p2326_p0, %p2320_p11 }
  0x22   :  { %2330 = shalt.err (!%p2327_p1)
}
  0x23   :  { %s2431_s1 = smov 256   ;;  %s2432_s19 = smov 16  }
  0x24   :  { %28 = dma.hbm_to_vmem [thread:$0]  %s2932_s0, 2048, %s2475_s24, [#allocation3], %s2431_s1, %s2431_s1, %s2432_s19  }
  0x25   :  { %s2433_s22 = smov [#allocation7]   ;;  %s2434_s25 = smov [#allocation8]  }
  0x26   :  { %s44_s23 = sshll.u32 %s2433_s22, 4  ;;  %s56_s26 = sshll.u32 %s2434_s25, 4  ;;  %s45_s23 = int_to_ptr.vmem [resolvable:$true] %s44_s23  ;;  %s2506_s26 = int_to_ptr.vmem [resolvable:$true] %s56_s26 }
  0x27   :  { %s2331_s29 = scalar_lea.hbm %s2934_s2, 4096 }
  0x28   :  { %p2332_p2 = scmp.ne.s32.totalorder %s2934_s2, %s2331_s29  ;;  %p2335_p3 = scmp.lt.u32.totalorder %s2331_s29, %s2934_s2 }
  0x2a   :  { %p2337_p4 = pnand %p2335_p3, %p2332_p2 }
  0x2c   :  { %2340 = shalt.err (!%p2337_p4)
}
  0x2d   :  { %s2341_s0 = scalar_lea.vmem %s45_s23, 4096  ;;  %p2346_p6 = scmp.lt.s32.totalorder %s45_s23, %s45_s23 }
  0x2e   :  { %p2342_p5 = scmp.ne.s32.totalorder %s45_s23, %s2341_s0  ;;  %p2347_p7 = scmp.lt.s32.totalorder %s2341_s0, %s2341_s0 }
  0x30   :  { %p2348_p8 = por %p2347_p7, %p2346_p6 }
  0x32   :  { %p2349_p9 = pnand %p2348_p8, %p2342_p5 }
  0x34   :  { %2352 = shalt.err (!%p2349_p9)
}
  0x35   :  { %50 = dma.hbm_to_vmem [thread:$0]  %s2934_s2, 4096, %s45_s23, [#allocation6], %s2431_s1, %s2431_s1, %s2432_s19  }
  0x36   :  { %s2353_s13 = scalar_lea.hbm %s2935_s3, 4096 }
  0x37   :  { %p2354_p10 = scmp.ne.s32.totalorder %s2935_s3, %s2353_s13  ;;  %p2357_p11 = scmp.lt.u32.totalorder %s2353_s13, %s2935_s3 }
  0x39   :  { %p2359_p12 = pnand %p2357_p11, %p2354_p10 }
  0x3b   :  { %2362 = shalt.err (!%p2359_p12)
}
  0x3c   :  { %s2363_s18 = scalar_lea.vmem %s2506_s26, 4096  ;;  %p2368_p0 = scmp.lt.s32.totalorder %s2506_s26, %s2506_s26 }
  0x3d   :  { %p2364_p13 = scmp.ne.s32.totalorder %s2506_s26, %s2363_s18  ;;  %p2369_p1 = scmp.lt.s32.totalorder %s2363_s18, %s2363_s18 }
  0x3f   :  { %p2370_p2 = por %p2369_p1, %p2368_p0 }
  0x41   :  { %p2371_p3 = pnand %p2370_p2, %p2364_p13 }
  0x43   :  { %2374 = shalt.err (!%p2371_p3)
}
  0x44   :  { %s2435_s2 = smov 128   ;;  %s2436_s1 = smov 8  }
  0x45   :  { %62 = dma.hbm_to_vmem [thread:$0]  %s2935_s3, 4096, %s2506_s26, [#allocation9], %s2435_s2, %s2435_s2, %s2436_s1  }
  0x46   :  { %2419 = dma.done.wait [#allocation3], 2048  }
  0x47   :  { %2420 = vsyncadd [#allocation3], 4294965248 }
  0x48   :  { %2421 = dma.done.wait [#allocation6], 4224  }
  0x49   :  { %2422 = vsyncadd [#allocation6], 4294963072 }
  0x4a   :  { %2423 = dma.done.wait [#allocation9], 4096  }
  0x4b   :  { %2424 = vsyncadd [#allocation9], 4294963200  ;;  %v2437_v0 = vmov 0.0   ;;  %v84_v1 = vld [vmem:[#allocation7 + $0x8] sm:$0xff]  ;;  %v86_v2 = vld [vmem:[#allocation7 + $0x18] sm:$0xff] }
  0x4c   :  { %215 = vmatprep.mubr.f32.mxu0 %v2437_v0  ;;  %v83_v3 = vld [vmem:[#allocation7] sm:$0xff]  ;;  %v2541_v4 = vpack.c.bf16 %v86_v2, %v84_v1  ;;  %v85_v5 = vld [vmem:[#allocation7 + $0x10] sm:$0xff]  ;;  %v88_v6 = vld [vmem:[#allocation7 + $0x28] sm:$0xff] }
  0x4d   :  { %v90_v7 = vld [vmem:[#allocation7 + $0x38] sm:$0xff]  ;;  %v2543_v8 = vpack.c.bf16 %v85_v5, %v83_v3  ;;  %v87_v10 = vld [vmem:[#allocation7 + $0x20] sm:$0xff]  ;;  %v89_v11 = vld [vmem:[#allocation7 + $0x30] sm:$0xff] }
  0x4e   :  { %v2545_v9 = vpack.c.bf16 %v90_v7, %v88_v6  ;;  %v92_v12 = vld [vmem:[#allocation7 + $0x48] sm:$0xff]  ;;  %1733 = vmatprep.subr.bf16.mxu0 %v2541_v4  ;;  %v94_v13 = vld [vmem:[#allocation7 + $0x58] sm:$0xff]  ;;  %v2549_v14 = vpack.c.bf16 %v89_v11, %v87_v10  ;;  %v91_v16 = vld [vmem:[#allocation7 + $0x40] sm:$0xff] }
  0x4f   :  { %1735 = vmatpush1.bf16.msra.mxu0 %v2543_v8  ;;  %v2552_v15 = vpack.c.bf16 %v94_v13, %v92_v12  ;;  %v93_v17 = vld [vmem:[#allocation7 + $0x50] sm:$0xff]  ;;  %v96_v18 = vld [vmem:[#allocation7 + $0x68] sm:$0xff]  ;;  %v98_v19 = vld [vmem:[#allocation7 + $0x78] sm:$0xff] }
  0x50   :  { %1737 = vmatprep.subr.bf16.mxu0 %v2545_v9  ;;  %v2555_v20 = vpack.c.bf16 %v93_v17, %v91_v16  ;;  %v2558_v21 = vpack.c.bf16 %v98_v19, %v96_v18  ;;  %v95_v22 = vld [vmem:[#allocation7 + $0x60] sm:$0xff]  ;;  %v97_v23 = vld [vmem:[#allocation7 + $0x70] sm:$0xff]  ;;  %v100_v24 = vld [vmem:[#allocation7 + $0x88] sm:$0xff] }
  0x51   :  { %v102_v25 = vld [vmem:[#allocation7 + $0x98] sm:$0xff]  ;;  %v99_v26 = vld [vmem:[#allocation7 + $0x80] sm:$0xff]  ;;  %v101_v27 = vld [vmem:[#allocation7 + $0x90] sm:$0xff]  ;;  %v2561_v31 = vpack.c.bf16 %v97_v23, %v95_v22 }
  0x52   :  { %v131_v28 = vld [vmem:[#allocation8 + $0x80] sm:$0xff]  ;;  %v132_v29 = vld [vmem:[#allocation8 + $0x88] sm:$0xff]  ;;  %v133_v34 = vld [vmem:[#allocation8 + $0x90] sm:$0xff]  ;;  %v2566_v36 = vpack.c.bf16 %v102_v25, %v100_v24  ;;  %v2577_v46 = vpack.c.bf16 %v101_v27, %v99_v26 }
  0x53   :  { %1739 = vmatpush1.bf16.msra.mxu0 %v2549_v14  ;;  %v115_v30 = vld [vmem:[#allocation8] sm:$0xff]  ;;  %v2563_v32 = vpack.c.bf16 %v132_v29, %v131_v28  ;;  %v116_v33 = vld [vmem:[#allocation8 + $0x8] sm:$0xff]  ;;  %v134_v35 = vld [vmem:[#allocation8 + $0x98] sm:$0xff] }
  0x54   :  { %1741 = vmatprep.subr.bf16.mxu0 %v2552_v15  ;;  %v2568_v37 = vpack.c.bf16 %v116_v33, %v115_v30  ;;  %v2570_v38 = vpack.c.bf16 %v134_v35, %v133_v34  ;;  %v117_v39 = vld [vmem:[#allocation8 + $0x10] sm:$0xff]  ;;  %v118_v40 = vld [vmem:[#allocation8 + $0x18] sm:$0xff]  ;;  %v135_v41 = vld [vmem:[#allocation8 + $0xa0] sm:$0xff] }
  0x55   :  { %v104_v42 = vld [vmem:[#allocation7 + $0xa8] sm:$0xff]  ;;  %v106_v43 = vld [vmem:[#allocation7 + $0xb8] sm:$0xff]  ;;  %1765 = vmatprep.subr.bf16.mxu1 %v2563_v32  ;;  %v2574_v45 = vpack.c.bf16 %v118_v40, %v117_v39  ;;  %v103_v47 = vld [vmem:[#allocation7 + $0xa0] sm:$0xff] }
  0x56   :  { %v136_v44 = vld [vmem:[#allocation8 + $0xa8] sm:$0xff]  ;;  %1767 = vmatpush3.bf16.msra.mxu1 %v2568_v37  ;;  %v119_v49 = vld [vmem:[#allocation8 + $0x20] sm:$0xff]  ;;  %v2583_v51 = vpack.c.bf16 %v106_v43, %v104_v42  ;;  %v105_v52 = vld [vmem:[#allocation7 + $0xb0] sm:$0xff] }
  0x57   :  { %1743 = vmatpush1.bf16.msra.mxu0 %v2555_v20  ;;  %1769 = vmatprep.subr.bf16.mxu1 %v2570_v38  ;;  %v2580_v48 = vpack.c.bf16 %v136_v44, %v135_v41  ;;  %v120_v50 = vld [vmem:[#allocation8 + $0x28] sm:$0xff]  ;;  %v137_v53 = vld [vmem:[#allocation8 + $0xb0] sm:$0xff]  ;;  %v138_v54 = vld [vmem:[#allocation8 + $0xb8] sm:$0xff]  ;;  %v2589_v58 = vpack.c.bf16 %v105_v52, %v103_v47 }
  0x58   :  { %1745 = vmatprep.subr.bf16.mxu0 %v2558_v21  ;;  %v108_v55 = vld [vmem:[#allocation7 + $0xc8] sm:$0xff]  ;;  %v110_v56 = vld [vmem:[#allocation7 + $0xd8] sm:$0xff]  ;;  %v2586_v57 = vpack.c.bf16 %v120_v50, %v119_v49  ;;  %v107_v59 = vld [vmem:[#allocation7 + $0xc0] sm:$0xff]  ;;  %v2592_v60 = vpack.c.bf16 %v138_v54, %v137_v53 }
  0x59   :  { %v121_v61 = vld [vmem:[#allocation8 + $0x30] sm:$0xff]  ;;  %v122_v62 = vld [vmem:[#allocation8 + $0x38] sm:$0xff]  ;;  %v2595_v63 = vpack.c.bf16 %v110_v56, %v108_v55  ;;  %v139_v2 = vld [vmem:[#allocation8 + $0xc0] sm:$0xff] }
  0x5a   :  { %1771 = vmatpush3.bf16.msra.mxu1 %v2574_v45  ;;  %v109_v1 = vld [vmem:[#allocation7 + $0xd0] sm:$0xff]  ;;  %v140_v3 = vld [vmem:[#allocation8 + $0xc8] sm:$0xff]  ;;  %v114_v6 = vld [vmem:[#allocation7 + $0xf8] sm:$0xff]  ;;  %v2598_v7 = vpack.c.bf16 %v122_v62, %v121_v61 }
  0x5b   :  { %1747 = vmatpush1.bf16.msra.mxu0 %v2561_v31  ;;  %1773 = vmatprep.subr.bf16.mxu1 %v2580_v48  ;;  %v112_v5 = vld [vmem:[#allocation7 + $0xe8] sm:$0xff]  ;;  %v2601_v10 = vpack.c.bf16 %v109_v1, %v107_v59  ;;  %v111_v11 = vld [vmem:[#allocation7 + $0xe0] sm:$0xff]  ;;  %v2604_v12 = vpack.c.bf16 %v140_v3, %v139_v2  ;;  %v113_v18 = vld [vmem:[#allocation7 + $0xf0] sm:$0xff] }
  0x5c   :  { %1749 = vmatprep.subr.bf16.mxu0 %v2566_v36  ;;  %v123_v13 = vld [vmem:[#allocation8 + $0x40] sm:$0xff]  ;;  %v124_v16 = vld [vmem:[#allocation8 + $0x48] sm:$0xff]  ;;  %v2607_v17 = vpack.c.bf16 %v114_v6, %v112_v5  ;;  %v141_v19 = vld [vmem:[#allocation8 + $0xd0] sm:$0xff]  ;;  %v2613_v24 = vpack.c.bf16 %v113_v18, %v111_v11 }
  0x5d   :  { %v142_v22 = vld [vmem:[#allocation8 + $0xd8] sm:$0xff]  ;;  %v2610_v23 = vpack.c.bf16 %v124_v16, %v123_v13  ;;  %v125_v26 = vld [vmem:[#allocation8 + $0x50] sm:$0xff]  ;;  %v143_v28 = vld [vmem:[#allocation8 + $0xe0] sm:$0xff] }
  0x5e   :  { %1775 = vmatpush3.bf16.msra.mxu1 %v2586_v57  ;;  %v2616_v25 = vpack.c.bf16 %v142_v22, %v141_v19  ;;  %v126_v27 = vld [vmem:[#allocation8 + $0x58] sm:$0xff]  ;;  %v144_v29 = vld [vmem:[#allocation8 + $0xe8] sm:$0xff]  ;;  %v127_v35 = vld [vmem:[#allocation8 + $0x60] sm:$0xff] }
  0x5f   :  { %1751 = vmatpush1.bf16.msra.mxu0 %v2577_v46  ;;  %1777 = vmatprep.subr.bf16.mxu1 %v2592_v60  ;;  %v2620_v30 = vpack.c.bf16 %v126_v27, %v125_v26  ;;  %v81_v33 = vld [vmem:[#allocation5] sm:$0xff]  ;;  %v2624_v34 = vpack.c.bf16 %v144_v29, %v143_v28  ;;  %v128_v39 = vld [vmem:[#allocation8 + $0x68] sm:$0xff]  ;;  %v145_v41 = vld [vmem:[#allocation8 + $0xf0] sm:$0xff] }
  0x60   :  { %1753 = vmatprep.subr.bf16.mxu0 %v2583_v51  ;;  %v2628_v40 = vpack.c.bf16 %v128_v39, %v127_v35  ;;  %v146_v42 = vld [vmem:[#allocation8 + $0xf8] sm:$0xff]  ;;  %v129_v44 = vld [vmem:[#allocation8 + $0x70] sm:$0xff]  ;;  %v150_v52 = vld [vmem:[#allocation2 + $0x8] sm:$0xff] }
  0x61   :  { %v2649_v43 = vpack.c.bf16 %v146_v42, %v145_v41  ;;  %v130_v47 = vld [vmem:[#allocation8 + $0x78] sm:$0xff]  ;;  %v312_v59 = vld [vmem:[#allocation2 + $0x10] sm:$0xff]  ;;  %v313_v61 = vld [vmem:[#allocation2 + $0x18] sm:$0xff] }
  0x62   :  { %1779 = vmatpush3.bf16.msra.mxu1 %v2598_v7  ;;  %v2651_v49 = vpack.c.bf16 %v130_v47, %v129_v44  ;;  %v149_v50 = vld [vmem:[#allocation2] sm:$0xff]  ;;  %v471_v19 = vld [vmem:[#allocation2 + $0x28] sm:$0xff]  ;;  %v628_v41 = vld [vmem:[#allocation2 + $0x30] sm:$0xff] }
  0x63   :  { %1755 = vmatpush1.bf16.msra.mxu0 %v2589_v58  ;;  %1781 = vmatprep.subr.bf16.mxu1 %v2604_v12  ;;  %v2692_v11 = vld [vmem:[%s2936_s4] ss:$0 sm:$0xff]  ;;  %v629_v42 = vld [vmem:[#allocation2 + $0x38] sm:$0xff]  ;;  %s2438_s4 = smov [#allocation11]  }
  0x64   :  { %1757 = vmatprep.subr.bf16.mxu0 %v2595_v63  ;;  %v470_v18 = vld [vmem:[#allocation2 + $0x20] sm:$0xff]  ;;  %s1436_s22 = sshll.u32 %s2438_s4, 4  ;;  %s1437_s22 = int_to_ptr.vmem [resolvable:$true] %s1436_s22 }
  0x65   :  { %s2375_s23 = scalar_lea.vmem %s1437_s22, 128  ;;  %p2380_p5 = scmp.lt.s32.totalorder %s1437_s22, %s1437_s22 }
  0x66   :  { %1783 = vmatpush3.bf16.msra.mxu1 %v2610_v23  ;;  %p2376_p4 = scmp.ne.s32.totalorder %s1437_s22, %s2375_s23  ;;  %p2381_p6 = scmp.lt.s32.totalorder %s2375_s23, %s2375_s23 }
  0x67   :  { %1759 = vmatpush1.bf16.msra.mxu0 %v2601_v10  ;;  %1785 = vmatprep.subr.bf16.mxu1 %v2616_v25 }
  0x68   :  { %1761 = vmatprep.subr.bf16.mxu0 %v2607_v17  ;;  %p2382_p7 = por %p2381_p6, %p2380_p5 }
  0x6a   :  { %1787 = vmatpush3.bf16.msra.mxu1 %v2620_v30  ;;  %p2383_p8 = pnand %p2382_p7, %p2376_p4 }
  0x6b   :  { %1763 = vmatpush1.bf16.msra.mxu0 %v2613_v24  ;;  %1789 = vmatprep.subr.bf16.mxu1 %v2624_v34 }
  0x6c   :  { %1797 = vmatprep.subr.bf16.mxu0 %v2541_v4 }
  0x6e   :  { %216 = vmatmul.mubr.f32.vlgmr.msra.gmra.mrb[0].mxu0 %v81_v33  ;;  %1791 = vmatpush3.bf16.msra.mxu1 %v2628_v40 }
  0x6f   :  { %1799 = vmatpush1.bf16.msra.mxu0 %v2543_v8  ;;  %378 = vmatprep.mubr.f32.mxu0 %v2437_v0 }
  0x70   :  { %1801 = vmatprep.subr.bf16.mxu0 %v2545_v9  ;;  %1793 = vmatprep.subr.bf16.mxu1 %v2649_v43 }
  0x72   :  { %1795 = vmatpush3.bf16.msra.mxu1 %v2651_v49 }
  0x73   :  { %1803 = vmatpush1.bf16.msra.mxu0 %v2549_v14  ;;  %1829 = vmatprep.subr.bf16.mxu1 %v2563_v32 }
  0x74   :  { %1805 = vmatprep.subr.bf16.mxu0 %v2552_v15 }
  0x77   :  { %1807 = vmatpush1.bf16.msra.mxu0 %v2555_v20 }
  0x78   :  { %1809 = vmatprep.subr.bf16.mxu0 %v2558_v21 }
  0x7b   :  { %1811 = vmatpush1.bf16.msra.mxu0 %v2561_v31 }
  0x7c   :  { %1813 = vmatprep.subr.bf16.mxu0 %v2566_v36 }
  0x7f   :  { %1815 = vmatpush1.bf16.msra.mxu0 %v2577_v46 }
  0x80   :  { %1817 = vmatprep.subr.bf16.mxu0 %v2583_v51 }
  0x83   :  { %1819 = vmatpush1.bf16.msra.mxu0 %v2589_v58 }
  0x84   :  { %1821 = vmatprep.subr.bf16.mxu0 %v2595_v63 }
  0x87   :  { %1823 = vmatpush1.bf16.msra.mxu0 %v2601_v10 }
  0x88   :  { %1825 = vmatprep.subr.bf16.mxu0 %v2607_v17 }
  0x8b   :  { %1827 = vmatpush1.bf16.msra.mxu0 %v2613_v24 }
  0x8c   :  { %1861 = vmatprep.subr.bf16.mxu0 %v2541_v4 }
 0x141   :  { %v217_v53 = vpop.f32.mrb[0].mxu0 }
 0x142   :  { %v222_v54 = vadd.f32 %v217_v53, %v149_v50  ;;  %v219_v55 = vpop.f32.mrb[1].mxu0 }
 0x143   :  { %v223_v56 = vadd.f32 %v219_v55, %v150_v52 }
 0x144   :  { %379 = vmatmul.mubr.f32.vlgmr.msra.gmra.mrb[2].mxu0 %v222_v54 }
 0x145   :  { %294 = vmatprep.mubr.f32.mxu1 %v223_v56  ;;  %1863 = vmatpush1.bf16.msra.mxu0 %v2543_v8 }
 0x146   :  { %295 = vmatmul.mubr.f32.vlgmr.msra.gmra.mrb[0].mxu1 %v222_v54  ;;  %1865 = vmatprep.subr.bf16.mxu0 %v2545_v9 }
 0x147   :  { %1831 = vmatpush3.bf16.msra.mxu1 %v2568_v37  ;;  %536 = vmatprep.mubr.f32.mxu0 %v2437_v0 }
 0x148   :  { %1833 = vmatprep.subr.bf16.mxu1 %v2570_v38 }
 0x149   :  { %1867 = vmatpush1.bf16.msra.mxu0 %v2549_v14 }
 0x14a   :  { %1869 = vmatprep.subr.bf16.mxu0 %v2552_v15 }
 0x14b   :  { %1835 = vmatpush3.bf16.msra.mxu1 %v2574_v45 }
 0x14c   :  { %1837 = vmatprep.subr.bf16.mxu1 %v2580_v48 }
 0x14d   :  { %1871 = vmatpush1.bf16.msra.mxu0 %v2555_v20 }
 0x14e   :  { %1873 = vmatprep.subr.bf16.mxu0 %v2558_v21 }
 0x14f   :  { %1839 = vmatpush3.bf16.msra.mxu1 %v2586_v57 }
 0x150   :  { %1841 = vmatprep.subr.bf16.mxu1 %v2592_v60 }
 0x151   :  { %1875 = vmatpush1.bf16.msra.mxu0 %v2561_v31 }
 0x152   :  { %1877 = vmatprep.subr.bf16.mxu0 %v2566_v36 }
 0x153   :  { %1843 = vmatpush3.bf16.msra.mxu1 %v2598_v7 }
 0x154   :  { %1845 = vmatprep.subr.bf16.mxu1 %v2604_v12 }
 0x155   :  { %1879 = vmatpush1.bf16.msra.mxu0 %v2577_v46 }
 0x156   :  { %1881 = vmatprep.subr.bf16.mxu0 %v2583_v51 }
 0x157   :  { %1847 = vmatpush3.bf16.msra.mxu1 %v2610_v23 }
 0x158   :  { %1849 = vmatprep.subr.bf16.mxu1 %v2616_v25 }
 0x159   :  { %1883 = vmatpush1.bf16.msra.mxu0 %v2589_v58 }
 0x15a   :  { %1885 = vmatprep.subr.bf16.mxu0 %v2595_v63 }
 0x15b   :  { %1851 = vmatpush3.bf16.msra.mxu1 %v2620_v30 }
 0x15c   :  { %1853 = vmatprep.subr.bf16.mxu1 %v2624_v34 }
 0x15d   :  { %1887 = vmatpush1.bf16.msra.mxu0 %v2601_v10 }
 0x15e   :  { %1889 = vmatprep.subr.bf16.mxu0 %v2607_v17 }
 0x15f   :  { %1855 = vmatpush3.bf16.msra.mxu1 %v2628_v40 }
 0x160   :  { %1857 = vmatprep.subr.bf16.mxu1 %v2649_v43 }
 0x161   :  { %1891 = vmatpush1.bf16.msra.mxu0 %v2613_v24 }
 0x162   :  { %1925 = vmatprep.subr.bf16.mxu0 %v2541_v4 }
 0x163   :  { %1859 = vmatpush3.bf16.msra.mxu1 %v2651_v49 }
 0x164   :  { %1893 = vmatprep.subr.bf16.mxu1 %v2563_v32 }
 0x217   :  { %v380_v62 = vpop.f32.mrb[2].mxu0 }
 0x218   :  { %v385_v1 = vadd.f32 %v380_v62, %v312_v59  ;;  %v382_v2 = vpop.f32.mrb[3].mxu0  ;;  %v786_v59 = vld [vmem:[#allocation2 + $0x40] sm:$0xff] }
 0x219   :  { %v386_v3 = vadd.f32 %v382_v2, %v313_v61  ;;  %v1484_v5 = vpop.f32.mrb[0].mxu1  ;;  %v787_v61 = vld [vmem:[#allocation2 + $0x48] sm:$0xff] }
 0x21a   :  { %v1485_v6 = vpop.f32.mrb[1].mxu1  ;;  %537 = vmatmul.mubr.f32.vlgmr.msra.gmra.mrb[4].mxu0 %v385_v1 }
 0x21b   :  { %v1486_v13 = vadd.f32 %v1485_v6, %v1484_v5  ;;  %451 = vmatprep.mubr.f32.mxu1 %v386_v3  ;;  %1927 = vmatpush1.bf16.msra.mxu0 %v2543_v8 }
 0x21c   :  { %452 = vmatmul.mubr.f32.vlgmr.msra.gmra.mrb[2].mxu1 %v385_v1  ;;  %1929 = vmatprep.subr.bf16.mxu0 %v2545_v9 }
 0x21d   :  { %v2697_v16 = vadd.f32 %v1486_v13, %v2692_v11  ;;  %1895 = vmatpush3.bf16.msra.mxu1 %v2568_v37  ;;  %694 = vmatprep.mubr.f32.mxu0 %v2437_v0 }
 0x21e   :  { %1897 = vmatprep.subr.bf16.mxu1 %v2570_v38 }
 0x21f   :  { %300 = vmax.xlane.f32.xlu0 %v2697_v16  ;;  %1931 = vmatpush1.bf16.msra.mxu0 %v2549_v14 }
 0x220   :  { %1933 = vmatprep.subr.bf16.mxu0 %v2552_v15 }
 0x221   :  { %1899 = vmatpush3.bf16.msra.mxu1 %v2574_v45 }
 0x222   :  { %1901 = vmatprep.subr.bf16.mxu1 %v2580_v48 }
 0x223   :  { %1935 = vmatpush1.bf16.msra.mxu0 %v2555_v20 }
 0x224   :  { %1937 = vmatprep.subr.bf16.mxu0 %v2558_v21 }
 0x225   :  { %1903 = vmatpush3.bf16.msra.mxu1 %v2586_v57 }
 0x226   :  { %1905 = vmatprep.subr.bf16.mxu1 %v2592_v60 }
 0x227   :  { %1939 = vmatpush1.bf16.msra.mxu0 %v2561_v31 }
 0x228   :  { %1941 = vmatprep.subr.bf16.mxu0 %v2566_v36 }
 0x229   :  { %1907 = vmatpush3.bf16.msra.mxu1 %v2598_v7 }
 0x22a   :  { %1909 = vmatprep.subr.bf16.mxu1 %v2604_v12 }
 0x22b   :  { %1943 = vmatpush1.bf16.msra.mxu0 %v2577_v46 }
 0x22c   :  { %1945 = vmatprep.subr.bf16.mxu0 %v2583_v51 }
 0x22d   :  { %1911 = vmatpush3.bf16.msra.mxu1 %v2610_v23 }
 0x22e   :  { %1913 = vmatprep.subr.bf16.mxu1 %v2616_v25 }
 0x22f   :  { %1947 = vmatpush1.bf16.msra.mxu0 %v2589_v58 }
 0x230   :  { %1949 = vmatprep.subr.bf16.mxu0 %v2595_v63 }
 0x231   :  { %1915 = vmatpush3.bf16.msra.mxu1 %v2620_v30 }
 0x232   :  { %1917 = vmatprep.subr.bf16.mxu1 %v2624_v34 }
 0x233   :  { %1951 = vmatpush1.bf16.msra.mxu0 %v2601_v10 }
 0x234   :  { %1953 = vmatprep.subr.bf16.mxu0 %v2607_v17 }
 0x235   :  { %1919 = vmatpush3.bf16.msra.mxu1 %v2628_v40 }
 0x236   :  { %1921 = vmatprep.subr.bf16.mxu1 %v2649_v43 }
 0x237   :  { %1955 = vmatpush1.bf16.msra.mxu0 %v2613_v24 }
 0x238   :  { %1989 = vmatprep.subr.bf16.mxu0 %v2541_v4 }
 0x239   :  { %1923 = vmatpush3.bf16.msra.mxu1 %v2651_v49 }
 0x23a   :  { %1957 = vmatprep.subr.bf16.mxu1 %v2563_v32 }
 0x2ed   :  { %v538_v22 = vpop.f32.mrb[4].mxu0 }
 0x2ee   :  { %v543_v26 = vadd.f32 %v538_v22, %v470_v18  ;;  %v540_v27 = vpop.f32.mrb[5].mxu0  ;;  %v945_v22 = vld [vmem:[#allocation2 + $0x58] sm:$0xff] }
 0x2ef   :  { %v544_v28 = vadd.f32 %v540_v27, %v471_v19  ;;  %v1519_v29 = vpop.f32.mrb[2].mxu1  ;;  %v944_v19 = vld [vmem:[#allocation2 + $0x50] sm:$0xff] }
 0x2f0   :  { %v1520_v33 = vpop.f32.mrb[3].mxu1  ;;  %695 = vmatmul.mubr.f32.vlgmr.msra.gmra.mrb[6].mxu0 %v543_v26 }
 0x2f1   :  { %v1521_v35 = vadd.f32 %v1520_v33, %v1519_v29  ;;  %609 = vmatprep.mubr.f32.mxu1 %v544_v28  ;;  %1991 = vmatpush1.bf16.msra.mxu0 %v2543_v8 }
 0x2f2   :  { %610 = vmatmul.mubr.f32.vlgmr.msra.gmra.mrb[4].mxu1 %v543_v26  ;;  %1993 = vmatprep.subr.bf16.mxu0 %v2545_v9 }
 0x2f3   :  { %v2734_v39 = vadd.f32 %v1521_v35, %v2692_v11  ;;  %1959 = vmatpush3.bf16.msra.mxu1 %v2568_v37  ;;  %852 = vmatprep.mubr.f32.mxu0 %v2437_v0 }
 0x2f4   :  { %1961 = vmatprep.subr.bf16.mxu1 %v2570_v38 }
 0x2f5   :  { %457 = vmax.xlane.f32.xlu0 %v2734_v39  ;;  %1995 = vmatpush1.bf16.msra.mxu0 %v2549_v14 }
 0x2f6   :  { %1997 = vmatprep.subr.bf16.mxu0 %v2552_v15 }
 0x2f7   :  { %1963 = vmatpush3.bf16.msra.mxu1 %v2574_v45 }
 0x2f8   :  { %1965 = vmatprep.subr.bf16.mxu1 %v2580_v48 }
 0x2f9   :  { %1999 = vmatpush1.bf16.msra.mxu0 %v2555_v20 }
 0x2fa   :  { %2001 = vmatprep.subr.bf16.mxu0 %v2558_v21 }
 0x2fb   :  { %1967 = vmatpush3.bf16.msra.mxu1 %v2586_v57 }
 0x2fc   :  { %1969 = vmatprep.subr.bf16.mxu1 %v2592_v60 }
 0x2fd   :  { %2003 = vmatpush1.bf16.msra.mxu0 %v2561_v31 }
 0x2fe   :  { %2005 = vmatprep.subr.bf16.mxu0 %v2566_v36 }
 0x2ff   :  { %1971 = vmatpush3.bf16.msra.mxu1 %v2598_v7 }
 0x300   :  { %1973 = vmatprep.subr.bf16.mxu1 %v2604_v12 }
 0x301   :  { %2007 = vmatpush1.bf16.msra.mxu0 %v2577_v46 }
 0x302   :  { %2009 = vmatprep.subr.bf16.mxu0 %v2583_v51 }
 0x303   :  { %1975 = vmatpush3.bf16.msra.mxu1 %v2610_v23 }
 0x304   :  { %1977 = vmatprep.subr.bf16.mxu1 %v2616_v25 }
 0x305   :  { %2011 = vmatpush1.bf16.msra.mxu0 %v2589_v58 }
 0x306   :  { %2013 = vmatprep.subr.bf16.mxu0 %v2595_v63 }
 0x307   :  { %1979 = vmatpush3.bf16.msra.mxu1 %v2620_v30 }
 0x308   :  { %1981 = vmatprep.subr.bf16.mxu1 %v2624_v34 }
 0x309   :  { %2015 = vmatpush1.bf16.msra.mxu0 %v2601_v10 }
 0x30a   :  { %2017 = vmatprep.subr.bf16.mxu0 %v2607_v17 }
 0x30b   :  { %1983 = vmatpush3.bf16.msra.mxu1 %v2628_v40 }
 0x30c   :  { %1985 = vmatprep.subr.bf16.mxu1 %v2649_v43 }
 0x30d   :  { %2019 = vmatpush1.bf16.msra.mxu0 %v2613_v24 }
 0x30e   :  { %2053 = vmatprep.subr.bf16.mxu0 %v2541_v4 }
 0x30f   :  { %1987 = vmatpush3.bf16.msra.mxu1 %v2651_v49 }
 0x310   :  { %2021 = vmatprep.subr.bf16.mxu1 %v2563_v32 }
 0x3c3   :  { %v696_v44 = vpop.f32.mrb[6].mxu0 }
 0x3c4   :  { %v701_v47 = vadd.f32 %v696_v44, %v628_v41  ;;  %v698_v50 = vpop.f32.mrb[7].mxu0 }
 0x3c5   :  { %v702_v52 = vadd.f32 %v698_v50, %v629_v42  ;;  %v1554_v53 = vpop.f32.mrb[4].mxu1 }
 0x3c6   :  { %v1555_v54 = vpop.f32.mrb[5].mxu1  ;;  %853 = vmatmul.mubr.f32.vlgmr.msra.gmra.mrb[8].mxu0 %v701_v47 }
 0x3c7   :  { %v1556_v55 = vadd.f32 %v1555_v54, %v1554_v53  ;;  %767 = vmatprep.mubr.f32.mxu1 %v702_v52  ;;  %2055 = vmatpush1.bf16.msra.mxu0 %v2543_v8 }
 0x3c8   :  { %768 = vmatmul.mubr.f32.vlgmr.msra.gmra.mrb[6].mxu1 %v701_v47  ;;  %2057 = vmatprep.subr.bf16.mxu0 %v2545_v9 }
 0x3c9   :  { %v2771_v56 = vadd.f32 %v1556_v55, %v2692_v11  ;;  %2023 = vmatpush3.bf16.msra.mxu1 %v2568_v37  ;;  %1010 = vmatprep.mubr.f32.mxu0 %v2437_v0 }
 0x3ca   :  { %2025 = vmatprep.subr.bf16.mxu1 %v2570_v38 }
 0x3cb   :  { %615 = vmax.xlane.f32.xlu1 %v2771_v56  ;;  %2059 = vmatpush1.bf16.msra.mxu0 %v2549_v14 }
 0x3cc   :  { %2061 = vmatprep.subr.bf16.mxu0 %v2552_v15 }
 0x3cd   :  { %2027 = vmatpush3.bf16.msra.mxu1 %v2574_v45 }
 0x3ce   :  { %2029 = vmatprep.subr.bf16.mxu1 %v2580_v48 }
 0x3cf   :  { %2063 = vmatpush1.bf16.msra.mxu0 %v2555_v20 }
 0x3d0   :  { %2065 = vmatprep.subr.bf16.mxu0 %v2558_v21 }
 0x3d1   :  { %2031 = vmatpush3.bf16.msra.mxu1 %v2586_v57 }
 0x3d2   :  { %2033 = vmatprep.subr.bf16.mxu1 %v2592_v60 }
 0x3d3   :  { %2067 = vmatpush1.bf16.msra.mxu0 %v2561_v31 }
 0x3d4   :  { %2069 = vmatprep.subr.bf16.mxu0 %v2566_v36 }
 0x3d5   :  { %2035 = vmatpush3.bf16.msra.mxu1 %v2598_v7 }
 0x3d6   :  { %2037 = vmatprep.subr.bf16.mxu1 %v2604_v12 }
 0x3d7   :  { %2071 = vmatpush1.bf16.msra.mxu0 %v2577_v46 }
 0x3d8   :  { %2073 = vmatprep.subr.bf16.mxu0 %v2583_v51 }
 0x3d9   :  { %2039 = vmatpush3.bf16.msra.mxu1 %v2610_v23 }
 0x3da   :  { %2041 = vmatprep.subr.bf16.mxu1 %v2616_v25 }
 0x3db   :  { %2075 = vmatpush1.bf16.msra.mxu0 %v2589_v58 }
 0x3dc   :  { %2077 = vmatprep.subr.bf16.mxu0 %v2595_v63 }
 0x3dd   :  { %2043 = vmatpush3.bf16.msra.mxu1 %v2620_v30 }
 0x3de   :  { %2045 = vmatprep.subr.bf16.mxu1 %v2624_v34 }
 0x3df   :  { %2079 = vmatpush1.bf16.msra.mxu0 %v2601_v10 }
 0x3e0   :  { %2081 = vmatprep.subr.bf16.mxu0 %v2607_v17 }
 0x3e1   :  { %2047 = vmatpush3.bf16.msra.mxu1 %v2628_v40 }
 0x3e2   :  { %2049 = vmatprep.subr.bf16.mxu1 %v2649_v43 }
 0x3e3   :  { %2083 = vmatpush1.bf16.msra.mxu0 %v2613_v24 }
 0x3e4   :  { %2117 = vmatprep.subr.bf16.mxu0 %v2541_v4 }
 0x3e5   :  { %2051 = vmatpush3.bf16.msra.mxu1 %v2651_v49 }
 0x3e6   :  { %2085 = vmatprep.subr.bf16.mxu1 %v2563_v32 }
 0x499   :  { %v854_v62 = vpop.f32.mrb[8].mxu0 }
 0x49a   :  { %v859_v1 = vadd.f32 %v854_v62, %v786_v59  ;;  %v856_v2 = vpop.f32.mrb[9].mxu0 }
 0x49b   :  { %v860_v3 = vadd.f32 %v856_v2, %v787_v61  ;;  %v1589_v5 = vpop.f32.mrb[6].mxu1 }
 0x49c   :  { %v1590_v6 = vpop.f32.mrb[7].mxu1  ;;  %1011 = vmatmul.mubr.f32.vlgmr.msra.gmra.mrb[10].mxu0 %v859_v1 }
 0x49d   :  { %v1591_v13 = vadd.f32 %v1590_v6, %v1589_v5  ;;  %925 = vmatprep.mubr.f32.mxu1 %v860_v3  ;;  %2119 = vmatpush1.bf16.msra.mxu0 %v2543_v8 }
 0x49e   :  { %926 = vmatmul.mubr.f32.vlgmr.msra.gmra.mrb[8].mxu1 %v859_v1  ;;  %2121 = vmatprep.subr.bf16.mxu0 %v2545_v9 }
 0x49f   :  { %v2808_v18 = vadd.f32 %v1591_v13, %v2692_v11  ;;  %2087 = vmatpush3.bf16.msra.mxu1 %v2568_v37  ;;  %1168 = vmatprep.mubr.f32.mxu0 %v2437_v0 }
 0x4a0   :  { %2089 = vmatprep.subr.bf16.mxu1 %v2570_v38 }
 0x4a1   :  { %773 = vmax.xlane.f32.xlu1 %v2808_v18  ;;  %2123 = vmatpush1.bf16.msra.mxu0 %v2549_v14 }
 0x4a2   :  { %2125 = vmatprep.subr.bf16.mxu0 %v2552_v15 }
 0x4a3   :  { %2091 = vmatpush3.bf16.msra.mxu1 %v2574_v45 }
 0x4a4   :  { %2093 = vmatprep.subr.bf16.mxu1 %v2580_v48 }
 0x4a5   :  { %2127 = vmatpush1.bf16.msra.mxu0 %v2555_v20 }
 0x4a6   :  { %2129 = vmatprep.subr.bf16.mxu0 %v2558_v21 }
 0x4a7   :  { %2095 = vmatpush3.bf16.msra.mxu1 %v2586_v57 }
 0x4a8   :  { %2097 = vmatprep.subr.bf16.mxu1 %v2592_v60 }
 0x4a9   :  { %2131 = vmatpush1.bf16.msra.mxu0 %v2561_v31 }
 0x4aa   :  { %2133 = vmatprep.subr.bf16.mxu0 %v2566_v36 }
 0x4ab   :  { %2099 = vmatpush3.bf16.msra.mxu1 %v2598_v7 }
 0x4ac   :  { %2101 = vmatprep.subr.bf16.mxu1 %v2604_v12 }
 0x4ad   :  { %2135 = vmatpush1.bf16.msra.mxu0 %v2577_v46 }
 0x4ae   :  { %2137 = vmatprep.subr.bf16.mxu0 %v2583_v51 }
 0x4af   :  { %2103 = vmatpush3.bf16.msra.mxu1 %v2610_v23 }
 0x4b0   :  { %2105 = vmatprep.subr.bf16.mxu1 %v2616_v25 }
 0x4b1   :  { %2139 = vmatpush1.bf16.msra.mxu0 %v2589_v58 }
 0x4b2   :  { %2141 = vmatprep.subr.bf16.mxu0 %v2595_v63 }
 0x4b3   :  { %2107 = vmatpush3.bf16.msra.mxu1 %v2620_v30 }
 0x4b4   :  { %2109 = vmatprep.subr.bf16.mxu1 %v2624_v34 }
 0x4b5   :  { %2143 = vmatpush1.bf16.msra.mxu0 %v2601_v10 }
 0x4b6   :  { %2145 = vmatprep.subr.bf16.mxu0 %v2607_v17 }
 0x4b7   :  { %2111 = vmatpush3.bf16.msra.mxu1 %v2628_v40 }
 0x4b8   :  { %2113 = vmatprep.subr.bf16.mxu1 %v2649_v43 }
 0x4b9   :  { %2147 = vmatpush1.bf16.msra.mxu0 %v2613_v24 }
 0x4ba   :  { %2181 = vmatprep.subr.bf16.mxu0 %v2541_v4 }
 0x4bb   :  { %2115 = vmatpush3.bf16.msra.mxu1 %v2651_v49 }
 0x4bc   :  { %2149 = vmatprep.subr.bf16.mxu1 %v2563_v32 }
 0x56f   :  { %v1012_v26 = vpop.f32.mrb[10].mxu0 }
 0x570   :  { %v1017_v27 = vadd.f32 %v1012_v26, %v944_v19  ;;  %v1014_v28 = vpop.f32.mrb[11].mxu0 }
 0x571   :  { %v1018_v29 = vadd.f32 %v1014_v28, %v945_v22  ;;  %v1624_v33 = vpop.f32.mrb[8].mxu1 }
 0x572   :  { %v1625_v35 = vpop.f32.mrb[9].mxu1  ;;  %1169 = vmatmul.mubr.f32.vlgmr.msra.gmra.mrb[12].mxu0 %v1017_v27 }
 0x573   :  { %v1626_v41 = vadd.f32 %v1625_v35, %v1624_v33  ;;  %1083 = vmatprep.mubr.f32.mxu1 %v1018_v29  ;;  %2183 = vmatpush1.bf16.msra.mxu0 %v2543_v8  ;;  %v1103_v8 = vld [vmem:[#allocation2 + $0x68] sm:$0xff] }
 0x574   :  { %1084 = vmatmul.mubr.f32.vlgmr.msra.gmra.mrb[10].mxu1 %v1017_v27  ;;  %2185 = vmatprep.subr.bf16.mxu0 %v2545_v9 }
 0x575   :  { %v2845_v4 = vadd.f32 %v1626_v41, %v2692_v11  ;;  %2151 = vmatpush3.bf16.msra.mxu1 %v2568_v37  ;;  %1326 = vmatprep.mubr.f32.mxu0 %v2437_v0  ;;  %v1102_v0 = vld [vmem:[#allocation2 + $0x60] sm:$0xff] }
 0x576   :  { %2153 = vmatprep.subr.bf16.mxu1 %v2570_v38 }
 0x577   :  { %931 = vmax.xlane.f32.xlu0 %v2845_v4  ;;  %2187 = vmatpush1.bf16.msra.mxu0 %v2549_v14 }
 0x578   :  { %2189 = vmatprep.subr.bf16.mxu0 %v2552_v15 }
 0x579   :  { %2155 = vmatpush3.bf16.msra.mxu1 %v2574_v45 }
 0x57a   :  { %2157 = vmatprep.subr.bf16.mxu1 %v2580_v48 }
 0x57b   :  { %2191 = vmatpush1.bf16.msra.mxu0 %v2555_v20 }
 0x57c   :  { %2193 = vmatprep.subr.bf16.mxu0 %v2558_v21 }
 0x57d   :  { %2159 = vmatpush3.bf16.msra.mxu1 %v2586_v57 }
 0x57e   :  { %2161 = vmatprep.subr.bf16.mxu1 %v2592_v60 }
 0x57f   :  { %2195 = vmatpush1.bf16.msra.mxu0 %v2561_v31 }
 0x580   :  { %2197 = vmatprep.subr.bf16.mxu0 %v2566_v36 }
 0x581   :  { %2163 = vmatpush3.bf16.msra.mxu1 %v2598_v7 }
 0x582   :  { %2165 = vmatprep.subr.bf16.mxu1 %v2604_v12 }
 0x583   :  { %2199 = vmatpush1.bf16.msra.mxu0 %v2577_v46 }
 0x584   :  { %2201 = vmatprep.subr.bf16.mxu0 %v2583_v51 }
 0x585   :  { %2167 = vmatpush3.bf16.msra.mxu1 %v2610_v23 }
 0x586   :  { %2169 = vmatprep.subr.bf16.mxu1 %v2616_v25 }
 0x587   :  { %2203 = vmatpush1.bf16.msra.mxu0 %v2589_v58  ;;  %v1260_v58 = vld [vmem:[#allocation2 + $0x70] sm:$0xff] }
 0x588   :  { %2205 = vmatprep.subr.bf16.mxu0 %v2595_v63 }
 0x589   :  { %2171 = vmatpush3.bf16.msra.mxu1 %v2620_v30 }
 0x58a   :  { %2173 = vmatprep.subr.bf16.mxu1 %v2624_v34 }
 0x58b   :  { %2207 = vmatpush1.bf16.msra.mxu0 %v2601_v10 }
 0x58c   :  { %2209 = vmatprep.subr.bf16.mxu0 %v2607_v17 }
 0x58d   :  { %2175 = vmatpush3.bf16.msra.mxu1 %v2628_v40 }
 0x58e   :  { %2177 = vmatprep.subr.bf16.mxu1 %v2649_v43 }
 0x58f   :  { %2211 = vmatpush1.bf16.msra.mxu0 %v2613_v24 }
 0x591   :  { %2179 = vmatpush3.bf16.msra.mxu1 %v2651_v49 }
 0x592   :  { %2213 = vmatprep.subr.bf16.mxu1 %v2563_v32  ;;  %v301_v32 = vpop.xlane.xlu0 %300 }
 0x645   :  { %v1170_v9 = vpop.f32.mrb[12].mxu0 }
 0x646   :  { %v1175_v14 = vadd.f32 %v1170_v9, %v1102_v0  ;;  %v1172_v15 = vpop.f32.mrb[13].mxu0 }
 0x647   :  { %v1176_v20 = vadd.f32 %v1172_v15, %v1103_v8  ;;  %v1659_v21 = vpop.f32.mrb[10].mxu1 }
 0x648   :  { %v1660_v31 = vpop.f32.mrb[11].mxu1  ;;  %1327 = vmatmul.mubr.f32.vlgmr.msra.gmra.mrb[14].mxu0 %v1175_v14 }
 0x649   :  { %v1661_v36 = vadd.f32 %v1660_v31, %v1659_v21  ;;  %1241 = vmatprep.mubr.f32.mxu1 %v1176_v20 }
 0x64a   :  { %1242 = vmatmul.mubr.f32.vlgmr.msra.gmra.mrb[12].mxu1 %v1175_v14 }
 0x64b   :  { %v2879_v46 = vadd.f32 %v1661_v36, %v2692_v11  ;;  %2215 = vmatpush3.bf16.msra.mxu1 %v2568_v37  ;;  %v302_v37 = vsub.f32 %v2697_v16, %v301_v32 }
 0x64c   :  { %2217 = vmatprep.subr.bf16.mxu1 %v2570_v38  ;;  %v458_v38 = vpop.xlane.xlu0 %457 }
 0x64d   :  { %1089 = vmax.xlane.f32.xlu1 %v2879_v46  ;;  %v459_v6 = vsub.f32 %v2734_v39, %v458_v38 }
 0x64f   :  { %2219 = vmatpush3.bf16.msra.mxu1 %v2574_v45  ;;  %v616_v45 = vpop.xlane.xlu1 %615  ;;  %v460_v19 = vmul.f32 1.442695, %v459_v6 }
 0x650   :  { %2221 = vmatprep.subr.bf16.mxu1 %v2580_v48  ;;  %v303_v48 = vmul.f32 1.442695, %v302_v37  ;;  %v617_v51 = vsub.f32 %v2771_v56, %v616_v45 }
 0x652   :  { %2255 = vpow2.f32 %v303_v48 }
 0x653   :  { %2223 = vmatpush3.bf16.msra.mxu1 %v2586_v57  ;;  %v932_v57 = vpop.xlane.xlu0 %931  ;;  %v774_v13 = vpop.xlane.xlu1 %773 }
 0x654   :  { %2225 = vmatprep.subr.bf16.mxu1 %v2592_v60  ;;  %v1261_v60 = vld [vmem:[#allocation2 + $0x78] sm:$0xff]  ;;  %v933_v10 = vsub.f32 %v2845_v4, %v932_v57  ;;  %v775_v22 = vsub.f32 %v2808_v18, %v774_v13 }
 0x656   :  { %v776_v27 = vmul.f32 1.442695, %v775_v22 }
 0x657   :  { %2227 = vmatpush3.bf16.msra.mxu1 %v2598_v7  ;;  %v618_v7 = vmul.f32 1.442695, %v617_v51 }
 0x658   :  { %2229 = vmatprep.subr.bf16.mxu1 %v2604_v12 }
 0x659   :  { %2257 = vpow2.f32 %v618_v7 }
 0x65b   :  { %2231 = vmatpush3.bf16.msra.mxu1 %v2610_v23 }
 0x65c   :  { %2233 = vmatprep.subr.bf16.mxu1 %v2616_v25 }
 0x65f   :  { %2235 = vmatpush3.bf16.msra.mxu1 %v2620_v30 }
 0x660   :  { %2237 = vmatprep.subr.bf16.mxu1 %v2624_v34  ;;  %v934_v34 = vmul.f32 1.442695, %v933_v10 }
 0x662   :  { %2259 = vpow2.f32 %v934_v34 }
 0x663   :  { %2239 = vmatpush3.bf16.msra.mxu1 %v2628_v40 }
 0x664   :  { %2241 = vmatprep.subr.bf16.mxu1 %v2649_v43  ;;  %v2256_v43 = vpop.eup %2255 }
 0x667   :  { %2243 = vmatpush3.bf16.msra.mxu1 %v2651_v49  ;;  %v2258_v49 = vpop.eup %2257 }
 0x66c   :  { %v2260_v16 = vpop.eup %2259 }
 0x6da   :  { %v1090_v26 = vpop.xlane.xlu1 %1089 }
 0x6db   :  { %v1091_v28 = vsub.f32 %v2879_v46, %v1090_v26 }
 0x6dd   :  { %v1092_v41 = vmul.f32 1.442695, %v1091_v28 }
 0x71b   :  { %v1328_v63 = vpop.f32.mrb[14].mxu0 }
 0x71c   :  { %v1333_v12 = vadd.f32 %v1328_v63, %v1260_v58  ;;  %v1330_v17 = vpop.f32.mrb[15].mxu0 }
 0x71d   :  { %v1334_v23 = vadd.f32 %v1330_v17, %v1261_v60  ;;  %v1694_v24 = vpop.f32.mrb[12].mxu1 }
 0x71e   :  { %1417 = vst [vmem:[#allocation11] sm:$0xff] %v1333_v12  ;;  %v1695_v25 = vpop.f32.mrb[13].mxu1 }
 0x71f   :  { %v1696_v30 = vadd.f32 %v1695_v25, %v1694_v24  ;;  %1399 = vmatprep.mubr.f32.mxu1 %v1334_v23 }
 0x720   :  { %1400 = vmatmul.mubr.f32.vlgmr.msra.gmra.mrb[14].mxu1 %v1333_v12 }
 0x721   :  { %v1244_v40 = vadd.f32 %v1696_v30, %v2692_v11 }
 0x723   :  { %1247 = vmax.xlane.f32.xlu0 %v1244_v40 }
 0x727   :  { %305 = vadd.xlane.f32.xlu0 %v2256_v43 }
 0x72b   :  { %620 = vadd.xlane.f32.xlu0 %v2258_v49 }
 0x72f   :  { %936 = vadd.xlane.f32.xlu0 %v2260_v16 }
 0x7b0   :  { %v1248_v42 = vpop.xlane.xlu0 %1247 }
 0x7b1   :  { %v1249_v44 = vsub.f32 %v1244_v40, %v1248_v42 }
 0x7b3   :  { %v1250_v47 = vmul.f32 1.442695, %v1249_v44 }
 0x7b4   :  { %v306_v50 = vpop.xlane.xlu0 %305 }
 0x7b5   :  { %2261 = vpow2.f32 %v1250_v47 }
 0x7b6   :  { %2263 = vlog2.f32 %v306_v50 }
 0x7b8   :  { %v621_v52 = vpop.xlane.xlu0 %620 }
 0x7b9   :  { %2265 = vlog2.f32 %v621_v52 }
 0x7bc   :  { %v937_v53 = vpop.xlane.xlu0 %936 }
 0x7bd   :  { %2267 = vlog2.f32 %v937_v53 }
 0x7be   :  { %2269 = vpow2.f32 %v460_v19 }
 0x7bf   :  { %v2262_v54 = vpop.eup %2261  ;;  %2271 = vpow2.f32 %v776_v27 }
 0x7c0   :  { %v2264_v55 = vpop.eup %2263  ;;  %1252 = vadd.xlane.f32.xlu0 %v2262_v54  ;;  %2273 = vpow2.f32 %v1092_v41 }
 0x7c1   :  { %v308_v56 = vmul.f32 0.6931472, %v2264_v55 }
 0x7c3   :  { %v2266_v59 = vpop.eup %2265  ;;  %v309_v61 = vsub.f32 %v302_v37, %v308_v56 }
 0x7c4   :  { %v623_v62 = vmul.f32 0.6931472, %v2266_v59 }
 0x7c5   :  { %310 = vst [vmem:[#allocation10] sm:$0xff] %v309_v61 }
 0x7c6   :  { %v624_v1 = vsub.f32 %v617_v51, %v623_v62 }
 0x7c7   :  { %v2268_v2 = vpop.eup %2267 }
 0x7c8   :  { %626 = vst [vmem:[#allocation10 + $0x10] sm:$0xff] %v624_v1  ;;  %v939_v3 = vmul.f32 0.6931472, %v2268_v2  ;;  %v2270_v0 = vpop.eup %2269 }
 0x7c9   :  { %v2272_v39 = vpop.eup %2271 }
 0x7ca   :  { %v940_v5 = vsub.f32 %v933_v10, %v939_v3  ;;  %v2274_v8 = vpop.eup %2273 }
 0x7cc   :  { %942 = vst [vmem:[#allocation10 + $0x20] sm:$0xff] %v940_v5 }
 0x7f3   :  { %v1729_v29 = vpop.f32.mrb[14].mxu1 }
 0x7f4   :  { %v1730_v33 = vpop.f32.mrb[15].mxu1 }
 0x7f5   :  { %v1731_v35 = vadd.f32 %v1730_v33, %v1729_v29 }
 0x7f7   :  { %v1402_v4 = vadd.f32 %v1731_v35, %v2692_v11 }
 0x7f9   :  { %1405 = vmax.xlane.f32.xlu1 %v1402_v4 }
 0x7fd   :  { %462 = vadd.xlane.f32.xlu1 %v2270_v0 }
 0x801   :  { %778 = vadd.xlane.f32.xlu1 %v2272_v39 }
 0x805   :  { %1094 = vadd.xlane.f32.xlu1 %v2274_v8 }
 0x84d   :  { %v1253_v18 = vpop.xlane.xlu0 %1252 }
 0x84e   :  { %2275 = vlog2.f32 %v1253_v18 }
 0x858   :  { %v2276_v9 = vpop.eup %2275 }
 0x859   :  { %v1255_v14 = vmul.f32 0.6931472, %v2276_v9 }
 0x85b   :  { %v1256_v15 = vsub.f32 %v1249_v44, %v1255_v14 }
 0x85d   :  { %1258 = vst [vmem:[#allocation10 + $0x30] sm:$0xff] %v1256_v15 }
 0x886   :  { %v1406_v20 = vpop.xlane.xlu1 %1405 }
 0x887   :  { %v1407_v21 = vsub.f32 %v1402_v4, %v1406_v20 }
 0x889   :  { %v1408_v31 = vmul.f32 1.442695, %v1407_v21 }
 0x88a   :  { %v463_v36 = vpop.xlane.xlu1 %462 }
 0x88b   :  { %2277 = vpow2.f32 %v1408_v31 }
 0x88c   :  { %2279 = vlog2.f32 %v463_v36 }
 0x88e   :  { %v779_v11 = vpop.xlane.xlu1 %778 }
 0x88f   :  { %2281 = vlog2.f32 %v779_v11 }
 0x892   :  { %v1095_v46 = vpop.xlane.xlu1 %1094 }
 0x893   :  { %2283 = vlog2.f32 %v1095_v46 }
 0x895   :  { %v2278_v32 = vpop.eup %2277 }
 0x896   :  { %v2280_v37 = vpop.eup %2279  ;;  %1410 = vadd.xlane.f32.xlu1 %v2278_v32 }
 0x897   :  { %v465_v38 = vmul.f32 0.6931472, %v2280_v37 }
 0x899   :  { %v2282_v45 = vpop.eup %2281  ;;  %v466_v48 = vsub.f32 %v459_v6, %v465_v38 }
 0x89a   :  { %v781_v51 = vmul.f32 0.6931472, %v2282_v45 }
 0x89b   :  { %468 = vst [vmem:[#allocation10 + $0x8] sm:$0xff] %v466_v48 }
 0x89c   :  { %v782_v57 = vsub.f32 %v775_v22, %v781_v51 }
 0x89d   :  { %v2284_v58 = vpop.eup %2283 }
 0x89e   :  { %784 = vst [vmem:[#allocation10 + $0x18] sm:$0xff] %v782_v57  ;;  %v1097_v60 = vmul.f32 0.6931472, %v2284_v58 }
 0x8a0   :  { %v1098_v63 = vsub.f32 %v1091_v28, %v1097_v60 }
 0x8a2   :  { %1100 = vst [vmem:[#allocation10 + $0x28] sm:$0xff] %v1098_v63 }
 0x8a3   :  { %2386 = shalt.err (!%p2383_p8)
}
 0x8a4   :  { %s2387_s27 = scalar_lea.hbm %s2938_s6, 128 }
 0x8a5   :  { %p2388_p9 = scmp.ne.s32.totalorder %s2938_s6, %s2387_s27  ;;  %p2391_p10 = scmp.lt.u32.totalorder %s2387_s27, %s2938_s6 }
 0x8a7   :  { %p2393_p11 = pnand %p2391_p10, %p2388_p9 }
 0x8a9   :  { %2396 = shalt.err (!%p2393_p11)
}
 0x8aa   :  { %1439 = dma.vmem_to_hbm [thread:$0]  %s1437_s22, 128, %s2938_s6, [#allocation12]  }
 0x8ab   :  { %s2439_s0 = smov [#allocation10]  }
 0x8ac   :  { %s1423_s24 = sshll.u32 %s2439_s0, 4  ;;  %s1424_s24 = int_to_ptr.vmem [resolvable:$true] %s1423_s24 }
 0x8ad   :  { %s2397_s10 = scalar_lea.vmem %s1424_s24, 1024  ;;  %p2402_p13 = scmp.lt.s32.totalorder %s1424_s24, %s1424_s24 }
 0x8ae   :  { %p2398_p12 = scmp.ne.s32.totalorder %s1424_s24, %s2397_s10  ;;  %p2403_p0 = scmp.lt.s32.totalorder %s2397_s10, %s2397_s10 }
 0x8b0   :  { %p2404_p1 = por %p2403_p0, %p2402_p13 }
 0x8b2   :  { %p2405_p2 = pnand %p2404_p1, %p2398_p12 }
 0x923   :  { %v1411_v7 = vpop.xlane.xlu1 %1410 }
 0x924   :  { %2285 = vlog2.f32 %v1411_v7 }
 0x92e   :  { %v2286_v10 = vpop.eup %2285 }
 0x92f   :  { %v1413_v12 = vmul.f32 0.6931472, %v2286_v10 }
 0x931   :  { %v1414_v17 = vsub.f32 %v1407_v21, %v1413_v12 }
 0x933   :  { %1416 = vst [vmem:[#allocation10 + $0x38] sm:$0xff] %v1414_v17 }
 0x934   :  { %2408 = shalt.err (!%p2405_p2)
}
 0x935   :  { %s2409_s6 = scalar_lea.hbm %s2937_s5, 1024 }
 0x936   :  { %p2410_p3 = scmp.ne.s32.totalorder %s2937_s5, %s2409_s6  ;;  %p2413_p4 = scmp.lt.u32.totalorder %s2409_s6, %s2937_s5 }
 0x938   :  { %p2415_p5 = pnand %p2413_p4, %p2410_p3 }
 0x93a   :  { %2418 = shalt.err (!%p2415_p5)
}
 0x93b   :  { %1429 = dma.vmem_to_hbm [thread:$0]  %s1424_s24, 1024, %s2937_s5, [#allocation4], %s2435_s2, %s2435_s2, %s2436_s1  }
 0x93c   :  { %2425 = dma.done.wait [#allocation4], 1024  }
 0x93d   :  { %2426 = vsyncadd [#allocation4], 4294966272 }
 0x93e   :  { %2427 = dma.done.wait [#allocation12], 128  }
 0x93f   :  { %2428 = vsyncadd [#allocation12], 4294967168 }
 0x940   :  { %1446 = vsyncpa [#allocation3], 1 }
 0x941   :  { %1447 = vsyncpa [#allocation6], 1 }
 0x942   :  { %1448 = vsyncpa [#allocation9], 1 }
 0x943   :  { %1449 = vsyncpa [#allocation4], 1 }
 0x944   :  { %1450 = vsyncpa [#allocation12], 1 }

</bundles_post_ra>
